<compile_context>
chip_gen: v7x
topology: tpu7x:2x2x1
jax: 0.10.0
libtpu: 0.0.40
codegen_flags: <defaults>
</compile_context>

<pallas_src>
import jax
import jax.numpy as jnp
from jax.experimental import pallas as pl
from jax.experimental.pallas import tpu as pltpu

EPS = 1e-5


def mlp_kernel(x_ref, w1_ref, gamma_ref, beta_ref, w2_ref, b2_ref, o_ref, acc_ref):
    """Grid step (i = D_out tile [parallel], j = H tile [reduction])."""
    j = pl.program_id(1)

    @pl.when(j == 0)
    def _init():
        acc_ref[...] = jnp.zeros_like(acc_ref)

    # ---- Linear 1 column tile: [B, th] (bf16 MXU operands, f32 accumulation) ----
    # b1 is intentionally omitted: train-mode BN's mean subtraction cancels it.
    h = jnp.dot(x_ref[...], w1_ref[...], preferred_element_type=jnp.float32)

    # ---- BatchNorm1d, one-pass batch stats (biased, PyTorch train mode) ----
    mean = jnp.mean(h, axis=0, keepdims=True)          # [1, th]
    ex2 = jnp.mean(h * h, axis=0, keepdims=True)       # [1, th]
    var = ex2 - mean * mean                            # f32; cancellation is benign here

    gamma = gamma_ref[pl.ds(j, 1), :]                  # resident slab, row j -> [1, th]
    beta = beta_ref[pl.ds(j, 1), :]
    scale = gamma * jax.lax.rsqrt(var + EPS)           # rsqrt -> EUP (free slot)
    shift = beta - mean * scale

    # ---- fused BN apply + ReLU: one mul + one add + one max over [B, th] ----
    h_act = jnp.maximum(h * scale + shift, 0.0)

    # ---- Linear 2 partial product, accumulated over the H tiles ----
    acc_ref[...] += jnp.dot(h_act.astype(w2_ref.dtype), w2_ref[...],
                            preferred_element_type=jnp.float32)

    @pl.when(j == pl.num_programs(1) - 1)
    def _finalize():
        o_ref[...] = (acc_ref[...] + b2_ref[...]).astype(o_ref.dtype)


def mlp_forward(x, w1, gamma, beta, w2, b2, *, tile_h=None, dout_tiles=None):
    """x: [B, D_in]; w1: [D_in, H]; w2: [H, D_out]; gamma/beta: [1, H]; b2: [1, D_out]."""
    B, D_in = x.shape
    H = w1.shape[1]
    D_out = w2.shape[1]

    # bf16 MXU operands; these are no-ops when params are stored bf16 (init_params).
    x = x if x.dtype == jnp.bfloat16 else x.astype(jnp.bfloat16)
    w1 = w1 if w1.dtype == jnp.bfloat16 else w1.astype(jnp.bfloat16)
    w2 = w2 if w2.dtype == jnp.bfloat16 else w2.astype(jnp.bfloat16)
    gamma = gamma.astype(jnp.float32).reshape(1, H)
    beta = beta.astype(jnp.float32).reshape(1, H)
    b2 = b2.astype(jnp.float32).reshape(1, D_out)

    # ---- generation-aware VMEM budget (v5e/v6e: 128 MiB, v7x: 64 MiB / core) ----
    try:
        vmem_cap = int(pltpu.get_tpu_info().vmem_capacity_bytes)
    except Exception:  # pragma: no cover - defensive fallback
        vmem_cap = 128 << 20
    budget = int(0.70 * vmem_cap)

    # ---- D_out tiling: 1 tile on single-TC parts (no Linear1 recompute);
    #      2 tiles on dual-TC v7x (64 MiB VMEM) so both cores are busy. ----
    if dout_tiles is None:
        dout_tiles = 2 if (vmem_cap <= (96 << 20) and D_out % 256 == 0) else 1
    if D_out % dout_tiles != 0:
        raise ValueError(f"D_out={D_out} must divide by dout_tiles={dout_tiles}")
    tn = D_out // dout_tiles
    if tn != D_out and tn % 128 != 0:
        raise ValueError(f"D_out tile {tn} must be a multiple of 128 (or equal D_out)")

    def vmem_need(th):
        return (2 * B * D_in * 2          # x block (constant index; budget 2 bufs)
                + 2 * D_in * th * 2       # W1 tile (double-buffered, bf16)
                + 2 * th * tn * 2         # W2 tile (double-buffered, bf16)
                + 2 * 2 * H * 4           # gamma + beta resident slabs (f32)
                + 2 * tn * 4              # b2
                + 2 * B * tn * 4          # output block (resident across j)
                + B * tn * 4              # f32 accumulator scratch
                + 2 * B * th * 4)         # in-flight f32 activation headroom

    # ---- H tiling: largest tile that fits the budget (fewer, larger steps) ----
    if tile_h is None:
        cands = [H] + [t for t in (4096, 2048, 1024, 512, 256, 128)
                       if t < H and H % t == 0]
        tile_h = next((t for t in cands if vmem_need(t) <= budget), cands[-1])
    if H % tile_h != 0 or (tile_h != H and tile_h % 128 != 0):
        raise ValueError(f"tile_h={tile_h} must divide H={H} and be a multiple of 128")
    th = tile_h
    n_j = H // th

    # Resident affine slabs, row-sliced in-kernel by the j grid index.
    gamma_r = gamma.reshape(n_j, th)
    beta_r = beta.reshape(n_j, th)

    needed = vmem_need(th)
    vmem_limit = int(min(max(needed + (4 << 20), 16 << 20), int(0.75 * vmem_cap)))

    cost = pl.CostEstimate(
        flops=2 * B * (D_in * H * dout_tiles + H * D_out),
        transcendentals=H * dout_tiles,
        bytes_accessed=(B * D_in * 2 + D_in * H * 2 * dout_tiles + H * D_out * 2
                        + (gamma.size + beta.size + b2.size) * 4 + B * D_out * 4),
    )

    grid_spec = pltpu.PrefetchScalarGridSpec(
        num_scalar_prefetch=0,
        grid=(dout_tiles, n_j),             # (parallel D_out tiles, H reduction last)
        in_specs=[
            pl.BlockSpec((B, D_in), lambda i, j: (0, 0)),   # x: constant index -> one DMA
            pl.BlockSpec((D_in, th), lambda i, j: (0, j)),  # W1 column tile
            pl.BlockSpec((n_j, th), lambda i, j: (0, 0)),   # gamma (resident slab)
            pl.BlockSpec((n_j, th), lambda i, j: (0, 0)),   # beta  (resident slab)
            pl.BlockSpec((th, tn), lambda i, j: (j, i)),    # W2 tile
            pl.BlockSpec((1, tn), lambda i, j: (0, i)),     # b2 (j-invariant)
        ],
        out_specs=pl.BlockSpec((B, tn), lambda i, j: (0, i)),  # resident across j
        scratch_shapes=[pltpu.VMEM((B, tn), jnp.float32)],
    )

    return pl.pallas_call(
        mlp_kernel,
        out_shape=jax.ShapeDtypeStruct((B, D_out), jnp.float32),
        grid_spec=grid_spec,
        compiler_params=pltpu.CompilerParams(
            dimension_semantics=("parallel", "arbitrary"),
            vmem_limit_bytes=vmem_limit,
        ),
        cost_estimate=cost,
    )(x, w1, gamma_r, beta_r, w2, b2)


def init_params(key, input_dim, hidden_dim, output_dim):
    """PyTorch-Linear-style init; weights stored persistently in bf16 for the MXU."""
    k1, k2, k3, k4 = jax.random.split(key, 4)
    bound1 = 1.0 / jnp.sqrt(input_dim)
    bound2 = 1.0 / jnp.sqrt(hidden_dim)
    # stored as [in, out] (pre-transposed relative to torch's [out, in])
    w1 = jax.random.uniform(k1, (input_dim, hidden_dim), jnp.float32,
                            -bound1, bound1).astype(jnp.bfloat16)
    b1 = jax.random.uniform(k2, (1, hidden_dim), jnp.float32, -bound1, bound1)
    w2 = jax.random.uniform(k3, (hidden_dim, output_dim), jnp.float32,
                            -bound2, bound2).astype(jnp.bfloat16)
    b2 = jax.random.uniform(k4, (1, output_dim), jnp.float32, -bound2, bound2)
    # BatchNorm1d affine defaults
    gamma = jnp.ones((1, hidden_dim), jnp.float32)
    beta = jnp.zeros((1, hidden_dim), jnp.float32)
    return w1, b1, gamma, beta, w2, b2


if __name__ == "__main__":
    # TPU-shaped but small sizes (multiples of 128) so tiles are lane-dense.
    B, input_dim, hidden_dim, output_dim = 128, 256, 512, 256

    key = jax.random.PRNGKey(0)
    kx, kp = jax.random.split(key)
    x = jax.random.normal(kx, (B, input_dim), jnp.float32)
    w1, b1, gamma, beta, w2, b2 = init_params(kp, input_dim, hidden_dim, output_dim)

    # Pure-JAX f32 reference of the original torch module — INCLUDING the Linear1
    # bias b1: train-mode BN cancels it, so the kernel (which omits it) must match.
    w1f, w2f = w1.astype(jnp.float32), w2.astype(jnp.float32)
    h = x @ w1f + b1
    mean = h.mean(axis=0, keepdims=True)
    var = ((h - mean) ** 2).mean(axis=0, keepdims=True)
    hn = (h - mean) / jnp.sqrt(var + EPS) * gamma + beta
    ref = jnp.maximum(hn, 0.0) @ w2f + b2

    x_bf = x.astype(jnp.bfloat16)  # cast once, outside the kernel hot path

    # 1) default tiling: problem fits VMEM -> single (or per-core single) grid step
    out = mlp_forward(x_bf, w1, gamma, beta, w2, b2)
    jax.block_until_ready(out)
    err = float(jnp.max(jnp.abs(out - ref)))
    assert jnp.allclose(out, ref, atol=5e-2, rtol=5e-2), f"default-path mismatch ({err})"

    # 2) force the tiled path: H reduction with accumulator + 2 parallel D_out tiles
    out2 = mlp_forward(x_bf, w1, gamma, beta, w2, b2, tile_h=128, dout_tiles=2)
    jax.block_until_ready(out2)
    err2 = float(jnp.max(jnp.abs(out2 - ref)))
    assert jnp.allclose(out2, ref, atol=5e-2, rtol=5e-2), f"tiled-path mismatch ({err2})"

    print("KERNEL_OK")
</pallas_src>

<mosaic_0001>
module attributes {stable_mosaic.version = 11 : i64} {
  func.func @mlp_kernel(%arg0: i32, %arg1: i32, %arg2: memref<128x256xbf16, #tpu.memory_space<vmem>>, %arg3: memref<256x512xbf16, #tpu.memory_space<vmem>>, %arg4: memref<1x512xf32, #tpu.memory_space<vmem>>, %arg5: memref<1x512xf32, #tpu.memory_space<vmem>>, %arg6: memref<512x256xbf16, #tpu.memory_space<vmem>>, %arg7: memref<1x256xf32, #tpu.memory_space<vmem>>, %arg8: memref<128x256xf32, #tpu.memory_space<vmem>>, %arg9: memref<128x256xf32, #tpu.memory_space<vmem>>) attributes {dimension_semantics = [#tpu.dimension_semantics<parallel>, #tpu.dimension_semantics<arbitrary>], iteration_bounds = array<i64: 1, 1>, scalar_prefetch = 0 : i64, scratch_operands = 1 : i64, tpu.core_type = #tpu.core_type<tc>, window_params = [{pipeline_mode = #tpu.pipeline_mode<synchronous>, transform_indices = @transform_0, window_bounds = array<i64: 128, 256>}, {transform_indices = @transform_1, window_bounds = array<i64: 256, 512>}, {pipeline_mode = #tpu.pipeline_mode<synchronous>, transform_indices = @transform_2, window_bounds = array<i64: 1, 512>}, {pipeline_mode = #tpu.pipeline_mode<synchronous>, transform_indices = @transform_3, window_bounds = array<i64: 1, 512>}, {transform_indices = @transform_4, window_bounds = array<i64: 512, 256>}, {transform_indices = @transform_5, window_bounds = array<i64: 1, 256>}, {transform_indices = @transform_6, window_bounds = array<i64: 128, 256>}]} {
    %c0_i32 = arith.constant 0 : i32
    %0 = arith.cmpi eq, %arg1, %c0_i32 : i32
    %1 = arith.extui %0 : i1 to i32
    %c0_i32_0 = arith.constant 0 : i32
    %2 = arith.cmpi ne, %1, %c0_i32_0 : i32
    scf.if %2 {
      %cst_21 = arith.constant 0.000000e+00 : f32
      %42 = vector.broadcast %cst_21 : f32 to vector<128x256xf32>
      %c0_22 = arith.constant 0 : index
      %c0_23 = arith.constant 0 : index
      %43 = vector.load %arg9[%c0_22, %c0_23] : memref<128x256xf32, #tpu.memory_space<vmem>>, vector<128x256xf32>
      tpu.vector_store %arg9[%c0_22, %c0_23], %42 {strides = array<i32>} : memref<128x256xf32, #tpu.memory_space<vmem>>, vector<128x256xf32>,
    } else {
    }
    %c0 = arith.constant 0 : index
    %c0_1 = arith.constant 0 : index
    %3 = vector.load %arg2[%c0, %c0_1] : memref<128x256xbf16, #tpu.memory_space<vmem>>, vector<128x256xbf16>
    %c0_2 = arith.constant 0 : index
    %c0_3 = arith.constant 0 : index
    %4 = vector.load %arg3[%c0_2, %c0_3] : memref<256x512xbf16, #tpu.memory_space<vmem>>, vector<256x512xbf16>
    %cst = arith.constant dense<0.000000e+00> : vector<128x512xf32>
    %5 = tpu.matmul %3, %4, %cst {dimension_numbers = #tpu.dot_dimension_numbers<[1], [0], [0], [1], [0, 0, 1, 1], [], []>} : vector<128x256xbf16>, vector<256x512xbf16>, vector<128x512xf32> -> vector<128x512xf32>
    %cst_4 = arith.constant dense<0.000000e+00> : vector<512xf32>
    %6 = vector.multi_reduction <add>, %5, %cst_4 [0] : vector<128x512xf32> to vector<512xf32>
    %7 = vector.shape_cast %6 : vector<512xf32> to vector<1x512xf32>
    %cst_5 = arith.constant 1.280000e+02 : f32
    %8 = vector.broadcast %cst_5 : f32 to vector<1x512xf32>
    %9 = arith.divf %7, %8 : vector<1x512xf32>
    %10 = arith.mulf %5, %5 : vector<128x512xf32>
    %cst_6 = arith.constant dense<0.000000e+00> : vector<512xf32>
    %11 = vector.multi_reduction <add>, %10, %cst_6 [0] : vector<128x512xf32> to vector<512xf32>
    %12 = vector.shape_cast %11 : vector<512xf32> to vector<1x512xf32>
    %cst_7 = arith.constant 1.280000e+02 : f32
    %13 = vector.broadcast %cst_7 : f32 to vector<1x512xf32>
    %14 = arith.divf %12, %13 : vector<1x512xf32>
    %15 = arith.mulf %9, %9 : vector<1x512xf32>
    %16 = arith.subf %14, %15 : vector<1x512xf32>
    %17 = arith.index_cast %arg1 : i32 to index
    %c0_8 = arith.constant 0 : index
    %18 = vector.load %arg4[%17, %c0_8] : memref<1x512xf32, #tpu.memory_space<vmem>>, vector<1x512xf32>
    %19 = arith.index_cast %arg1 : i32 to index
    %c0_9 = arith.constant 0 : index
    %20 = vector.load %arg5[%19, %c0_9] : memref<1x512xf32, #tpu.memory_space<vmem>>, vector<1x512xf32>
    %cst_10 = arith.constant 9.99999974E-6 : f32
    %21 = vector.broadcast %cst_10 : f32 to vector<1x512xf32>
    %22 = arith.addf %16, %21 : vector<1x512xf32>
    %23 = math.rsqrt %22 : vector<1x512xf32>
    %24 = arith.mulf %18, %23 : vector<1x512xf32>
    %25 = arith.mulf %9, %24 : vector<1x512xf32>
    %26 = arith.subf %20, %25 : vector<1x512xf32>
    %27 = vector.broadcast %24 : vector<1x512xf32> to vector<128x512xf32>
    %28 = arith.mulf %5, %27 : vector<128x512xf32>
    %29 = vector.broadcast %26 : vector<1x512xf32> to vector<128x512xf32>
    %30 = arith.addf %28, %29 : vector<128x512xf32>
    %cst_11 = arith.constant 0.000000e+00 : f32
    %31 = vector.broadcast %cst_11 : f32 to vector<128x512xf32>
    %32 = arith.maximumf %30, %31 : vector<128x512xf32>
    %c0_12 = arith.constant 0 : index
    %c0_13 = arith.constant 0 : index
    %33 = vector.load %arg9[%c0_12, %c0_13] : memref<128x256xf32, #tpu.memory_space<vmem>>, vector<128x256xf32>
    %34 = arith.truncf %32 : vector<128x512xf32> to vector<128x512xbf16>
    %c0_14 = arith.constant 0 : index
    %c0_15 = arith.constant 0 : index
    %35 = vector.load %arg6[%c0_14, %c0_15] : memref<512x256xbf16, #tpu.memory_space<vmem>>, vector<512x256xbf16>
    %cst_16 = arith.constant dense<0.000000e+00> : vector<128x256xf32>
    %36 = tpu.matmul %34, %35, %cst_16 {dimension_numbers = #tpu.dot_dimension_numbers<[1], [0], [0], [1], [0, 0, 1, 1], [], []>} : vector<128x512xbf16>, vector<512x256xbf16>, vector<128x256xf32> -> vector<128x256xf32>
    %37 = arith.addf %33, %36 : vector<128x256xf32>
    %c0_17 = arith.constant 0 : index
    %c0_18 = arith.constant 0 : index
    %38 = vector.load %arg9[%c0_17, %c0_18] : memref<128x256xf32, #tpu.memory_space<vmem>>, vector<128x256xf32>
    tpu.vector_store %arg9[%c0_17, %c0_18], %37 {strides = array<i32>} : memref<128x256xf32, #tpu.memory_space<vmem>>, vector<128x256xf32>,
    %c0_i32_19 = arith.constant 0 : i32
    %39 = arith.cmpi eq, %arg1, %c0_i32_19 : i32
    %40 = arith.extui %39 : i1 to i32
    %c0_i32_20 = arith.constant 0 : i32
    %41 = arith.cmpi ne, %40, %c0_i32_20 : i32
    scf.if %41 {
      %c0_21 = arith.constant 0 : index
      %c0_22 = arith.constant 0 : index
      %42 = vector.load %arg9[%c0_21, %c0_22] : memref<128x256xf32, #tpu.memory_space<vmem>>, vector<128x256xf32>
      %c0_23 = arith.constant 0 : index
      %c0_24 = arith.constant 0 : index
      %43 = vector.load %arg7[%c0_23, %c0_24] : memref<1x256xf32, #tpu.memory_space<vmem>>, vector<1x256xf32>
      %44 = vector.broadcast %43 : vector<1x256xf32> to vector<128x256xf32>
      %45 = arith.addf %42, %44 : vector<128x256xf32>
      %c0_25 = arith.constant 0 : index
      %c0_26 = arith.constant 0 : index
      %46 = vector.load %arg8[%c0_25, %c0_26] : memref<128x256xf32, #tpu.memory_space<vmem>>, vector<128x256xf32>
      tpu.vector_store %arg8[%c0_25, %c0_26], %45 {strides = array<i32>} : memref<128x256xf32, #tpu.memory_space<vmem>>, vector<128x256xf32>,
    } else {
    }
    return
  }
  func.func @transform_0(%arg0: i32, %arg1: i32) -> (i32, i32) {
    %c0_i32 = arith.constant 0 : i32
    %c0_i32_0 = arith.constant 0 : i32
    %c0_i32_1 = arith.constant 0 : i32
    return %c0_i32, %c0_i32_0 : i32, i32
  }
  func.func @transform_1(%arg0: i32, %arg1: i32) -> (i32, i32) {
    %c0_i32 = arith.constant 0 : i32
    %c0_i32_0 = arith.constant 0 : i32
    return %c0_i32, %arg1 : i32, i32
  }
  func.func @transform_2(%arg0: i32, %arg1: i32) -> (i32, i32) {
    %c0_i32 = arith.constant 0 : i32
    %c0_i32_0 = arith.constant 0 : i32
    %c0_i32_1 = arith.constant 0 : i32
    return %c0_i32, %c0_i32_0 : i32, i32
  }
  func.func @transform_3(%arg0: i32, %arg1: i32) -> (i32, i32) {
    %c0_i32 = arith.constant 0 : i32
    %c0_i32_0 = arith.constant 0 : i32
    %c0_i32_1 = arith.constant 0 : i32
    return %c0_i32, %c0_i32_0 : i32, i32
  }
  func.func @transform_4(%arg0: i32, %arg1: i32) -> (i32, i32) {
    %c0_i32 = arith.constant 0 : i32
    return %arg1, %arg0 : i32, i32
  }
  func.func @transform_5(%arg0: i32, %arg1: i32) -> (i32, i32) {
    %c0_i32 = arith.constant 0 : i32
    %c0_i32_0 = arith.constant 0 : i32
    return %c0_i32, %arg0 : i32, i32
  }
  func.func @transform_6(%arg0: i32, %arg1: i32) -> (i32, i32) {
    %c0_i32 = arith.constant 0 : i32
    %c0_i32_0 = arith.constant 0 : i32
    return %c0_i32, %arg0 : i32, i32
  }
}

</mosaic_0001>

<bundles_post_ra>
// kernel: tpu_custom_call.1
= control target key start
LH: loop header
LB: loop body
LE: loop exit
PB: predicated region body
PF: predicated region fallthrough
CT: control target
= control target key end

     0   :  { %11 = vsyncpa [#allocation4], 0  ;;  %s3603_s0 = inlined_call_operand.hbm [shape: bf16[128,256], index: 0, kind: input, shape index: {}]   ;;  %s3604_s1 = inlined_call_operand.hbm [shape: bf16[256,512], index: 1, kind: input, shape index: {}]   ;;  %s3605_s2 = inlined_call_operand.vmem [shape: f32[1,512], index: 2, kind: input, shape index: {}]   ;;  %s3606_s3 = inlined_call_operand.vmem [shape: f32[1,512], index: 3, kind: input, shape index: {}]   ;;  %s3607_s4 = inlined_call_operand.hbm [shape: bf16[512,256], index: 4, kind: input, shape index: {}]   ;;  %s3608_s5 = inlined_call_operand.vmem [shape: f32[1,256], index: 5, kind: input, shape index: {}]   ;;  %s3609_s6 = inlined_call_operand.hbm [shape: f32[128,256], index: 6, kind: output, shape index: {}]  }
   0x1   :  { %12 = vsyncpa [#allocation7], 0 }
   0x2   :  { %13 = vsyncpa [#allocation5], 0  ;;  %s2737_s21 = smov [#allocation6]   ;;  %s2643_s25 = scalar_lea.hbm %s3604_s1, 8192 }
   0x3   :  { %s31_s22 = sshll.u32 %s2737_s21, 4  ;;  %p2644_p0 = scmp.ne.s32.totalorder %s3604_s1, %s2643_s25  ;;  %s32_s22 = int_to_ptr.vmem [resolvable:$true] %s31_s22 }
   0x4   :  { %p2647_p1 = scmp.lt.u32.totalorder %s2643_s25, %s3604_s1 }
   0x6   :  { %p2649_p2 = pnand %p2647_p1, %p2644_p0 }
   0x8   :  { %2652 = shalt.err (!%p2649_p2)
}
   0x9   :  { %s2653_s30 = scalar_lea.vmem %s32_s22, 8192  ;;  %p2658_p4 = scmp.lt.s32.totalorder %s32_s22, %s32_s22 }
   0xa   :  { %p2654_p3 = scmp.ne.s32.totalorder %s32_s22, %s2653_s30  ;;  %p2659_p5 = scmp.lt.s32.totalorder %s2653_s30, %s2653_s30 }
   0xc   :  { %p2660_p6 = por %p2659_p5, %p2658_p4 }
   0xe   :  { %p2661_p7 = pnand %p2660_p6, %p2654_p3 }
  0x10   :  { %2664 = shalt.err (!%p2661_p7)
}
  0x11   :  { %s2738_s7 = smov 256   ;;  %s2739_s8 = smov 16  }
  0x12   :  { %37 = dma.hbm_to_vmem [thread:$0]  %s3604_s1, 8192, %s32_s22, [#allocation7], %s2738_s7, %s2738_s7, %s2739_s8  }
  0x13   :  { %s2740_s11 = smov [#allocation3]   ;;  %s2665_s15 = scalar_lea.hbm %s3603_s0, 2048 }
  0x14   :  { %s19_s12 = sshll.u32 %s2740_s11, 4  ;;  %p2666_p8 = scmp.ne.s32.totalorder %s3603_s0, %s2665_s15  ;;  %s20_s12 = int_to_ptr.vmem [resolvable:$true] %s19_s12 }
  0x15   :  { %p2669_p9 = scmp.lt.u32.totalorder %s2665_s15, %s3603_s0 }
  0x17   :  { %p2671_p10 = pnand %p2669_p9, %p2666_p8 }
  0x19   :  { %2674 = shalt.err (!%p2671_p10)
}
  0x1a   :  { %s2675_s20 = scalar_lea.vmem %s20_s12, 2048  ;;  %p2680_p12 = scmp.lt.s32.totalorder %s20_s12, %s20_s12 }
  0x1b   :  { %p2676_p11 = scmp.ne.s32.totalorder %s20_s12, %s2675_s20  ;;  %p2681_p13 = scmp.lt.s32.totalorder %s2675_s20, %s2675_s20 }
  0x1d   :  { %p2682_p0 = por %p2681_p13, %p2680_p12 }
  0x1f   :  { %p2683_p1 = pnand %p2682_p0, %p2676_p11 }
  0x21   :  { %2686 = shalt.err (!%p2683_p1)
}
  0x22   :  { %s2741_s1 = smov 128   ;;  %s2742_s21 = smov 8  }
  0x23   :  { %25 = dma.hbm_to_vmem [thread:$0]  %s3603_s0, 2048, %s20_s12, [#allocation4], %s2741_s1, %s2741_s1, %s2742_s21  }
  0x24   :  { %s2743_s24 = smov [#allocation8]   ;;  %s2687_s28 = scalar_lea.hbm %s3607_s4, 8192 }
  0x25   :  { %s47_s25 = sshll.u32 %s2743_s24, 4  ;;  %p2688_p2 = scmp.ne.s32.totalorder %s3607_s4, %s2687_s28  ;;  %s48_s25 = int_to_ptr.vmem [resolvable:$true] %s47_s25 }
  0x26   :  { %p2691_p3 = scmp.lt.u32.totalorder %s2687_s28, %s3607_s4 }
  0x28   :  { %p2693_p4 = pnand %p2691_p3, %p2688_p2 }
  0x2a   :  { %2696 = shalt.err (!%p2693_p4)
}
  0x2b   :  { %s2697_s11 = scalar_lea.vmem %s48_s25, 8192  ;;  %p2702_p6 = scmp.lt.s32.totalorder %s48_s25, %s48_s25 }
  0x2c   :  { %p2698_p5 = scmp.ne.s32.totalorder %s48_s25, %s2697_s11  ;;  %p2703_p7 = scmp.lt.s32.totalorder %s2697_s11, %s2697_s11 }
  0x2e   :  { %p2704_p8 = por %p2703_p7, %p2702_p6 }
  0x30   :  { %p2705_p9 = pnand %p2704_p8, %p2698_p5 }
  0x32   :  { %2708 = shalt.err (!%p2705_p9)
}
  0x33   :  { %53 = dma.hbm_to_vmem [thread:$0]  %s3607_s4, 8192, %s48_s25, [#allocation7], %s2741_s1, %s2741_s1, %s2742_s21  }
  0x34   :  { %2731 = dma.done.wait [#allocation4], 2048  }
  0x35   :  { %2732 = vsyncadd [#allocation4], 4294965248 }
  0x36   :  { %2733 = dma.done.wait [#allocation7], 16384  }
  0x37   :  { %2734 = vsyncadd [#allocation7], 4294950912  ;;  %v2419_v0 = vld [vmem:[#allocation6 + $0x4] ss:$16 sps:$4 sm:$0xff]   ;;  %v2421_v1 = vld [vmem:[#allocation6] ss:$16 sps:$4 sm:$0xff]  }
  0x38   :  { %581 = vmatprep.subr.bf16.mxu1 %v2419_v0  ;;  %v2422_v2 = vld [vmem:[#allocation6 + $0x24] ss:$16 sps:$4 sm:$0xff]   ;;  %v2424_v3 = vld [vmem:[#allocation6 + $0x20] ss:$16 sps:$4 sm:$0xff]   ;;  %v2472_v33 = vld [vmem:[#allocation6 + $0xc] ss:$16 sps:$4 sm:$0xff]  }
  0x39   :  { %582 = vmatpush1.bf16.msra.mxu1 %v2421_v1  ;;  %v2425_v4 = vld [vmem:[#allocation6 + $0x44] ss:$16 sps:$4 sm:$0xff]   ;;  %v2427_v5 = vld [vmem:[#allocation6 + $0x40] ss:$16 sps:$4 sm:$0xff]   ;;  %v2470_v35 = vld [vmem:[#allocation6 + $0x8] ss:$16 sps:$4 sm:$0xff]  }
  0x3a   :  { %583 = vmatprep.subr.bf16.mxu1 %v2422_v2  ;;  %v2428_v6 = vld [vmem:[#allocation6 + $0x64] ss:$16 sps:$4 sm:$0xff]   ;;  %v2430_v7 = vld [vmem:[#allocation6 + $0x60] ss:$16 sps:$4 sm:$0xff]   ;;  %v2475_v37 = vld [vmem:[#allocation6 + $0x2c] ss:$16 sps:$4 sm:$0xff]  }
  0x3b   :  { %v2431_v8 = vld [vmem:[#allocation6 + $0x84] ss:$16 sps:$4 sm:$0xff]   ;;  %v2433_v9 = vld [vmem:[#allocation6 + $0x80] ss:$16 sps:$4 sm:$0xff]   ;;  %v2473_v38 = vld [vmem:[#allocation6 + $0x28] ss:$16 sps:$4 sm:$0xff]  }
  0x3c   :  { %v2434_v10 = vld [vmem:[#allocation6 + $0xa4] ss:$16 sps:$4 sm:$0xff]   ;;  %v2436_v11 = vld [vmem:[#allocation6 + $0xa0] ss:$16 sps:$4 sm:$0xff]   ;;  %v2481_v39 = vld [vmem:[#allocation6 + $0x4c] ss:$16 sps:$4 sm:$0xff]  }
  0x3d   :  { %584 = vmatpush1.bf16.msra.mxu1 %v2424_v3  ;;  %v2437_v12 = vld [vmem:[#allocation6 + $0xc4] ss:$16 sps:$4 sm:$0xff]   ;;  %v2439_v14 = vld [vmem:[#allocation6 + $0xc0] ss:$16 sps:$4 sm:$0xff]   ;;  %v2479_v41 = vld [vmem:[#allocation6 + $0x48] ss:$16 sps:$4 sm:$0xff]  }
  0x3e   :  { %585 = vmatprep.subr.bf16.mxu1 %v2425_v4  ;;  %v2820_v13 = vld [vmem:[#allocation3 + $0x4] ss:$8 sps:$4 sm:$0xff]   ;;  %v2442_v16 = vld [vmem:[#allocation6 + $0xe0] ss:$16 sps:$4 sm:$0xff]   ;;  %v2825_v36 = vld [vmem:[#allocation3 + $0x14] ss:$8 sps:$4 sm:$0xff]  }
  0x3f   :  { %v2440_v15 = vld [vmem:[#allocation6 + $0xe4] ss:$16 sps:$4 sm:$0xff]   ;;  %613 = vmatprep.mubr.bf16.mxu1 %v2820_v13  ;;  %v2445_v18 = vld [vmem:[#allocation6 + $0x100] ss:$16 sps:$4 sm:$0xff]   ;;  %v2484_v43 = vld [vmem:[#allocation6 + $0x6c] ss:$16 sps:$4 sm:$0xff]  }
  0x40   :  { %v2443_v17 = vld [vmem:[#allocation6 + $0x104] ss:$16 sps:$4 sm:$0xff]   ;;  %v2448_v20 = vld [vmem:[#allocation6 + $0x120] ss:$16 sps:$4 sm:$0xff]   ;;  %v2482_v44 = vld [vmem:[#allocation6 + $0x68] ss:$16 sps:$4 sm:$0xff]  }
  0x41   :  { %586 = vmatpush1.bf16.msra.mxu1 %v2427_v5  ;;  %v2446_v19 = vld [vmem:[#allocation6 + $0x124] ss:$16 sps:$4 sm:$0xff]   ;;  %v2451_v22 = vld [vmem:[#allocation6 + $0x140] ss:$16 sps:$4 sm:$0xff]   ;;  %v2490_v45 = vld [vmem:[#allocation6 + $0x8c] ss:$16 sps:$4 sm:$0xff]  }
  0x42   :  { %587 = vmatprep.subr.bf16.mxu1 %v2428_v6  ;;  %v2449_v21 = vld [vmem:[#allocation6 + $0x144] ss:$16 sps:$4 sm:$0xff]   ;;  %v2454_v24 = vld [vmem:[#allocation6 + $0x160] ss:$16 sps:$4 sm:$0xff]   ;;  %v2488_v47 = vld [vmem:[#allocation6 + $0x88] ss:$16 sps:$4 sm:$0xff]  }
  0x43   :  { %v2452_v23 = vld [vmem:[#allocation6 + $0x164] ss:$16 sps:$4 sm:$0xff]   ;;  %v2457_v26 = vld [vmem:[#allocation6 + $0x180] ss:$16 sps:$4 sm:$0xff]   ;;  %v2493_v49 = vld [vmem:[#allocation6 + $0xac] ss:$16 sps:$4 sm:$0xff]  }
  0x44   :  { %v2455_v25 = vld [vmem:[#allocation6 + $0x184] ss:$16 sps:$4 sm:$0xff]   ;;  %v2460_v28 = vld [vmem:[#allocation6 + $0x1a0] ss:$16 sps:$4 sm:$0xff]   ;;  %v2491_v50 = vld [vmem:[#allocation6 + $0xa8] ss:$16 sps:$4 sm:$0xff]  }
  0x45   :  { %588 = vmatpush1.bf16.msra.mxu1 %v2430_v7  ;;  %v2458_v27 = vld [vmem:[#allocation6 + $0x1a4] ss:$16 sps:$4 sm:$0xff]   ;;  %v2463_v30 = vld [vmem:[#allocation6 + $0x1c0] ss:$16 sps:$4 sm:$0xff]   ;;  %v2499_v51 = vld [vmem:[#allocation6 + $0xcc] ss:$16 sps:$4 sm:$0xff]  }
  0x46   :  { %589 = vmatprep.subr.bf16.mxu1 %v2431_v8  ;;  %v2461_v29 = vld [vmem:[#allocation6 + $0x1c4] ss:$16 sps:$4 sm:$0xff]   ;;  %v2466_v32 = vld [vmem:[#allocation6 + $0x1e0] ss:$16 sps:$4 sm:$0xff]   ;;  %v2497_v53 = vld [vmem:[#allocation6 + $0xc8] ss:$16 sps:$4 sm:$0xff]  }
  0x47   :  { %v2464_v31 = vld [vmem:[#allocation6 + $0x1e4] ss:$16 sps:$4 sm:$0xff]   ;;  %v2823_v34 = vld [vmem:[#allocation3] ss:$8 sps:$4 sm:$0xff]   ;;  %v2829_v40 = vld [vmem:[#allocation3 + $0x10] ss:$8 sps:$4 sm:$0xff]  }
  0x48   :  { %v2831_v42 = vld [vmem:[#allocation3 + $0x24] ss:$8 sps:$4 sm:$0xff]   ;;  %v2835_v46 = vld [vmem:[#allocation3 + $0x20] ss:$8 sps:$4 sm:$0xff]   ;;  %v2837_v48 = vld [vmem:[#allocation3 + $0x34] ss:$8 sps:$4 sm:$0xff]  }
  0x49   :  { %590 = vmatpush1.bf16.msra.mxu1 %v2433_v9  ;;  %v2841_v52 = vld [vmem:[#allocation3 + $0x30] ss:$8 sps:$4 sm:$0xff]   ;;  %v2503_v54 = vld [vmem:[#allocation3 + $0x44] ss:$8 sps:$4 sm:$0xff]   ;;  %v2505_v58 = vld [vmem:[#allocation3 + $0x40] ss:$8 sps:$4 sm:$0xff]  }
  0x4a   :  { %591 = vmatprep.subr.bf16.mxu1 %v2434_v10  ;;  %v2502_v55 = vld [vmem:[#allocation6 + $0xec] ss:$16 sps:$4 sm:$0xff]   ;;  %v2500_v56 = vld [vmem:[#allocation6 + $0xe8] ss:$16 sps:$4 sm:$0xff]  }
  0x4b   :  { %v2508_v57 = vld [vmem:[#allocation6 + $0x10c] ss:$16 sps:$4 sm:$0xff]   ;;  %v2506_v59 = vld [vmem:[#allocation6 + $0x108] ss:$16 sps:$4 sm:$0xff]  }
  0x4c   :  { %v2512_v60 = vld [vmem:[#allocation3 + $0x54] ss:$8 sps:$4 sm:$0xff]   ;;  %v2509_v62 = vld [vmem:[#allocation6 + $0x128] ss:$16 sps:$4 sm:$0xff]   ;;  %v2521_v2 = vld [vmem:[#allocation3 + $0x64] ss:$8 sps:$4 sm:$0xff]  }
  0x4d   :  { %592 = vmatpush1.bf16.msra.mxu1 %v2436_v11  ;;  %v2511_v61 = vld [vmem:[#allocation6 + $0x12c] ss:$16 sps:$4 sm:$0xff]   ;;  %v2514_v0 = vld [vmem:[#allocation3 + $0x50] ss:$8 sps:$4 sm:$0xff]   ;;  %v2523_v6 = vld [vmem:[#allocation3 + $0x60] ss:$8 sps:$4 sm:$0xff]  }
  0x4e   :  { %593 = vmatprep.subr.bf16.mxu1 %v2437_v12  ;;  %v2517_v63 = vld [vmem:[#allocation6 + $0x14c] ss:$16 sps:$4 sm:$0xff]   ;;  %v2515_v1 = vld [vmem:[#allocation6 + $0x148] ss:$16 sps:$4 sm:$0xff]  }
  0x4f   :  { %v2520_v3 = vld [vmem:[#allocation6 + $0x16c] ss:$16 sps:$4 sm:$0xff]   ;;  %v2518_v4 = vld [vmem:[#allocation6 + $0x168] ss:$16 sps:$4 sm:$0xff]  }
  0x50   :  { %v2526_v5 = vld [vmem:[#allocation6 + $0x18c] ss:$16 sps:$4 sm:$0xff]   ;;  %v2524_v7 = vld [vmem:[#allocation6 + $0x188] ss:$16 sps:$4 sm:$0xff]  }
  0x51   :  { %594 = vmatpush1.bf16.msra.mxu1 %v2439_v14  ;;  %v2530_v8 = vld [vmem:[#allocation3 + $0x74] ss:$8 sps:$4 sm:$0xff]   ;;  %v2527_v10 = vld [vmem:[#allocation6 + $0x1a8] ss:$16 sps:$4 sm:$0xff]  }
  0x52   :  { %595 = vmatprep.subr.bf16.mxu1 %v2440_v15  ;;  %v2529_v9 = vld [vmem:[#allocation6 + $0x1ac] ss:$16 sps:$4 sm:$0xff]   ;;  %v2532_v12 = vld [vmem:[#allocation3 + $0x70] ss:$8 sps:$4 sm:$0xff]  }
  0x53   :  { %v2535_v11 = vld [vmem:[#allocation6 + $0x1cc] ss:$16 sps:$4 sm:$0xff]   ;;  %v2533_v14 = vld [vmem:[#allocation6 + $0x1c8] ss:$16 sps:$4 sm:$0xff]  }
  0x54   :  { %v2538_v15 = vld [vmem:[#allocation6 + $0x1ec] ss:$16 sps:$4 sm:$0xff]  }
  0x55   :  { %596 = vmatpush1.bf16.msra.mxu1 %v2442_v16  ;;  %v2536_v16 = vld [vmem:[#allocation6 + $0x1e8] ss:$16 sps:$4 sm:$0xff]  }
  0x56   :  { %597 = vmatprep.subr.bf16.mxu1 %v2443_v17  ;;  %v2541_v17 = vld [vmem:[#allocation8] ss:$8 sps:$4 sm:$0xff]  }
  0x59   :  { %598 = vmatpush1.bf16.msra.mxu1 %v2445_v18 }
  0x5a   :  { %599 = vmatprep.subr.bf16.mxu1 %v2446_v19 }
  0x5d   :  { %600 = vmatpush1.bf16.msra.mxu1 %v2448_v20  ;;  %v2542_v20 = vld [vmem:[#allocation8 + $0x14] ss:$8 sps:$4 sm:$0xff]  }
  0x5e   :  { %601 = vmatprep.subr.bf16.mxu1 %v2449_v21 }
  0x61   :  { %602 = vmatpush1.bf16.msra.mxu1 %v2451_v22  ;;  %v2544_v22 = vld [vmem:[#allocation8 + $0x10] ss:$8 sps:$4 sm:$0xff]  }
  0x62   :  { %603 = vmatprep.subr.bf16.mxu1 %v2452_v23 }
  0x65   :  { %604 = vmatpush1.bf16.msra.mxu1 %v2454_v24 }
  0x66   :  { %605 = vmatprep.subr.bf16.mxu1 %v2455_v25 }
  0x69   :  { %606 = vmatpush1.bf16.msra.mxu1 %v2457_v26 }
  0x6a   :  { %607 = vmatprep.subr.bf16.mxu1 %v2458_v27 }
  0x6d   :  { %608 = vmatpush1.bf16.msra.mxu1 %v2460_v28 }
  0x6e   :  { %609 = vmatprep.subr.bf16.mxu1 %v2461_v29 }
  0x71   :  { %610 = vmatpush1.bf16.msra.mxu1 %v2463_v30 }
  0x72   :  { %611 = vmatprep.subr.bf16.mxu1 %v2464_v31  ;;  %v2545_v31 = vld [vmem:[#allocation8 + $0x24] ss:$8 sps:$4 sm:$0xff]  }
  0x75   :  { %612 = vmatpush1.bf16.msra.mxu1 %v2466_v32 }
  0x76   :  { %694 = vmatprep.subr.bf16.mxu1 %v2472_v33  ;;  %v2547_v33 = vld [vmem:[#allocation8 + $0x20] ss:$8 sps:$4 sm:$0xff]  }
  0x78   :  { %614 = vmatmul.mubr.bf16.vlgmr.msra.gmra.mrb[0].mxu1 %v2823_v34 }
  0x79   :  { %695 = vmatpush1.bf16.msra.mxu1 %v2470_v35  ;;  %623 = vmatprep.mubr.bf16.mxu1 %v2825_v36 }
  0x7a   :  { %696 = vmatprep.subr.bf16.mxu1 %v2475_v37 }
  0x7d   :  { %697 = vmatpush1.bf16.msra.mxu1 %v2473_v38  ;;  %v2548_v38 = vld [vmem:[#allocation8 + $0x34] ss:$8 sps:$4 sm:$0xff]  }
  0x7e   :  { %698 = vmatprep.subr.bf16.mxu1 %v2481_v39 }
  0x80   :  { %624 = vmatmul.mubr.bf16.gmra.mrb[4].mxu1 %v2829_v40 }
  0x81   :  { %699 = vmatpush1.bf16.msra.mxu1 %v2479_v41  ;;  %633 = vmatprep.mubr.bf16.mxu1 %v2831_v42 }
  0x82   :  { %700 = vmatprep.subr.bf16.mxu1 %v2484_v43 }
  0x85   :  { %701 = vmatpush1.bf16.msra.mxu1 %v2482_v44 }
  0x86   :  { %702 = vmatprep.subr.bf16.mxu1 %v2490_v45 }
  0x88   :  { %634 = vmatmul.mubr.bf16.gmra.mrb[8].mxu1 %v2835_v46 }
  0x89   :  { %703 = vmatpush1.bf16.msra.mxu1 %v2488_v47  ;;  %643 = vmatprep.mubr.bf16.mxu1 %v2837_v48 }
  0x8a   :  { %704 = vmatprep.subr.bf16.mxu1 %v2493_v49 }
  0x8d   :  { %705 = vmatpush1.bf16.msra.mxu1 %v2491_v50 }
  0x8e   :  { %706 = vmatprep.subr.bf16.mxu1 %v2499_v51  ;;  %v2551_v51 = vld [vmem:[#allocation8 + $0x44] ss:$8 sps:$4 sm:$0xff]  }
  0x90   :  { %644 = vmatmul.mubr.bf16.gmra.mrb[12].mxu1 %v2841_v52 }
  0x91   :  { %707 = vmatpush1.bf16.msra.mxu1 %v2497_v53  ;;  %653 = vmatprep.mubr.bf16.mxu1 %v2503_v54  ;;  %v2553_v53 = vld [vmem:[#allocation8 + $0x40] ss:$8 sps:$4 sm:$0xff]  }
  0x92   :  { %708 = vmatprep.subr.bf16.mxu1 %v2502_v55 }
  0x95   :  { %709 = vmatpush1.bf16.msra.mxu1 %v2500_v56 }
  0x96   :  { %710 = vmatprep.subr.bf16.mxu1 %v2508_v57 }
  0x98   :  { %654 = vmatmul.mubr.bf16.gmra.mrb[16].mxu1 %v2505_v58 }
  0x99   :  { %711 = vmatpush1.bf16.msra.mxu1 %v2506_v59  ;;  %663 = vmatprep.mubr.bf16.mxu1 %v2512_v60 }
  0x9a   :  { %712 = vmatprep.subr.bf16.mxu1 %v2511_v61  ;;  %v2554_v61 = vld [vmem:[#allocation8 + $0x54] ss:$8 sps:$4 sm:$0xff]  }
  0x9d   :  { %713 = vmatpush1.bf16.msra.mxu1 %v2509_v62  ;;  %v2556_v62 = vld [vmem:[#allocation8 + $0x50] ss:$8 sps:$4 sm:$0xff]  }
  0x9e   :  { %714 = vmatprep.subr.bf16.mxu1 %v2517_v63 }
  0xa0   :  { %664 = vmatmul.mubr.bf16.gmra.mrb[20].mxu1 %v2514_v0 }
  0xa1   :  { %715 = vmatpush1.bf16.msra.mxu1 %v2515_v1  ;;  %673 = vmatprep.mubr.bf16.mxu1 %v2521_v2 }
  0xa2   :  { %716 = vmatprep.subr.bf16.mxu1 %v2520_v3 }
  0xa5   :  { %717 = vmatpush1.bf16.msra.mxu1 %v2518_v4 }
  0xa6   :  { %718 = vmatprep.subr.bf16.mxu1 %v2526_v5 }
  0xa8   :  { %674 = vmatmul.mubr.bf16.gmra.mrb[24].mxu1 %v2523_v6 }
  0xa9   :  { %719 = vmatpush1.bf16.msra.mxu1 %v2524_v7  ;;  %683 = vmatprep.mubr.bf16.mxu1 %v2530_v8  ;;  %v2557_v7 = vld [vmem:[#allocation8 + $0x64] ss:$8 sps:$4 sm:$0xff]  }
  0xaa   :  { %720 = vmatprep.subr.bf16.mxu1 %v2529_v9  ;;  %v2559_v9 = vld [vmem:[#allocation8 + $0x60] ss:$8 sps:$4 sm:$0xff]  }
  0xad   :  { %721 = vmatpush1.bf16.msra.mxu1 %v2527_v10 }
  0xae   :  { %722 = vmatprep.subr.bf16.mxu1 %v2535_v11 }
  0xb0   :  { %684 = vmatmul.mubr.bf16.gmra.mrb[28].mxu1 %v2532_v12 }
  0xb1   :  { %723 = vmatpush1.bf16.msra.mxu1 %v2533_v14  ;;  %726 = vmatprep.mubr.bf16.mxu1 %v2820_v13  ;;  %v2539_v13 = vld [vmem:[#allocation8 + $0x4] ss:$8 sps:$4 sm:$0xff]  }
  0xb2   :  { %724 = vmatprep.subr.bf16.mxu1 %v2538_v15  ;;  %1815 = vmatprep.subr.bf16.mxu0 %v2539_v13  ;;  %v2560_v15 = vld [vmem:[#allocation8 + $0x74] ss:$8 sps:$4 sm:$0xff]  }
  0xb3   :  { %1816 = vmatpush1.bf16.msra.mxu0 %v2541_v17 }
  0xb4   :  { %1817 = vmatprep.subr.bf16.mxu0 %v2542_v20  ;;  %v2562_v20 = vld [vmem:[#allocation8 + $0x70] ss:$8 sps:$4 sm:$0xff]  }
  0xb5   :  { %725 = vmatpush1.bf16.msra.mxu1 %v2536_v16 }
  0xb7   :  { %1818 = vmatpush1.bf16.msra.mxu0 %v2544_v22 }
  0xb8   :  { %727 = vmatmul.mubr.bf16.vlgmr.msra.gmra.mrb[32].mxu1 %v2823_v34  ;;  %1819 = vmatprep.subr.bf16.mxu0 %v2545_v31  ;;  %v2563_v31 = vld [vmem:[#allocation8 + $0x84] ss:$8 sps:$4 sm:$0xff]  }
  0xb9   :  { %736 = vmatprep.mubr.bf16.mxu1 %v2825_v36 }
  0xbb   :  { %1820 = vmatpush1.bf16.msra.mxu0 %v2547_v33  ;;  %v2565_v33 = vld [vmem:[#allocation8 + $0x80] ss:$8 sps:$4 sm:$0xff]  }
  0xbc   :  { %1821 = vmatprep.subr.bf16.mxu0 %v2548_v38 }
  0xc0   :  { %737 = vmatmul.mubr.bf16.gmra.mrb[36].mxu1 %v2829_v40 }
  0xc1   :  { %746 = vmatprep.mubr.bf16.mxu1 %v2831_v42  ;;  %v2550_v42 = vld [vmem:[#allocation8 + $0x30] ss:$8 sps:$4 sm:$0xff]  }
  0xc2   :  { %1822 = vmatpush1.bf16.msra.mxu0 %v2550_v42 }
  0xc3   :  { %1823 = vmatprep.subr.bf16.mxu0 %v2551_v51 }
  0xc6   :  { %1824 = vmatpush1.bf16.msra.mxu0 %v2553_v53 }
  0xc7   :  { %1825 = vmatprep.subr.bf16.mxu0 %v2554_v61 }
  0xc8   :  { %747 = vmatmul.mubr.bf16.gmra.mrb[40].mxu1 %v2835_v46 }
  0xc9   :  { %756 = vmatprep.mubr.bf16.mxu1 %v2837_v48 }
  0xca   :  { %1826 = vmatpush1.bf16.msra.mxu0 %v2556_v62 }
  0xcb   :  { %1827 = vmatprep.subr.bf16.mxu0 %v2557_v7 }
  0xce   :  { %1828 = vmatpush1.bf16.msra.mxu0 %v2559_v9 }
  0xcf   :  { %1829 = vmatprep.subr.bf16.mxu0 %v2560_v15 }
  0xd0   :  { %757 = vmatmul.mubr.bf16.gmra.mrb[44].mxu1 %v2841_v52 }
  0xd1   :  { %766 = vmatprep.mubr.bf16.mxu1 %v2503_v54 }
  0xd2   :  { %1830 = vmatpush1.bf16.msra.mxu0 %v2562_v20  ;;  %v2575_v20 = vld [vmem:[#allocation8 + $0xc4] ss:$8 sps:$4 sm:$0xff]  }
  0xd3   :  { %1831 = vmatprep.subr.bf16.mxu0 %v2563_v31 }
  0xd6   :  { %1832 = vmatpush1.bf16.msra.mxu0 %v2565_v33 }
  0xd8   :  { %767 = vmatmul.mubr.bf16.gmra.mrb[48].mxu1 %v2505_v58 }
  0xd9   :  { %776 = vmatprep.mubr.bf16.mxu1 %v2512_v60 }
  0xe0   :  { %777 = vmatmul.mubr.bf16.gmra.mrb[52].mxu1 %v2514_v0 }
  0xe1   :  { %786 = vmatprep.mubr.bf16.mxu1 %v2521_v2 }
  0xe8   :  { %787 = vmatmul.mubr.bf16.gmra.mrb[56].mxu1 %v2523_v6 }
  0xe9   :  { %796 = vmatprep.mubr.bf16.mxu1 %v2530_v8 }
  0xf0   :  { %797 = vmatmul.mubr.bf16.gmra.mrb[60].mxu1 %v2532_v12 }
 0x14b   :  { %v2852_v18 = vpop.f32.mrb[0].mxu1 }
 0x14c   :  { %v2854_v19 = vpop.f32.mrb[1].mxu1  ;;  %v896_v23 = vmul.f32 %v2852_v18, %v2852_v18 }
 0x14d   :  { %v2856_v21 = vpop.f32.mrb[2].mxu1  ;;  %v897_v27 = vmul.f32 %v2854_v19, %v2854_v19 }
 0x14e   :  { %v807_v24 = vadd.f32 %v2856_v21, %v2852_v18  ;;  %v900_v25 = vmul.f32 %v2856_v21, %v2856_v21  ;;  %v2864_v26 = vpop.f32.mrb[3].mxu1 }
 0x14f   :  { %v828_v28 = vadd.f32 %v2864_v26, %v2854_v19  ;;  %v901_v29 = vmul.f32 %v2864_v26, %v2864_v26 }
 0x150   :  { %v960_v30 = vadd.f32 %v900_v25, %v896_v23 }
 0x151   :  { %v981_v32 = vadd.f32 %v901_v29, %v897_v27 }
 0x153   :  { %v2872_v34 = vpop.f32.mrb[4].mxu1 }
 0x154   :  { %v808_v35 = vadd.f32 %v807_v24, %v2872_v34  ;;  %v904_v36 = vmul.f32 %v2872_v34, %v2872_v34  ;;  %v2877_v37 = vpop.f32.mrb[5].mxu1 }
 0x155   :  { %v829_v39 = vadd.f32 %v828_v28, %v2877_v37  ;;  %v905_v40 = vmul.f32 %v2877_v37, %v2877_v37  ;;  %v2882_v41 = vpop.f32.mrb[6].mxu1 }
 0x156   :  { %v961_v43 = vadd.f32 %v960_v30, %v904_v36  ;;  %v809_v44 = vadd.f32 %v808_v35, %v2882_v41  ;;  %v908_v45 = vmul.f32 %v2882_v41, %v2882_v41  ;;  %v2887_v46 = vpop.f32.mrb[7].mxu1 }
 0x157   :  { %v982_v47 = vadd.f32 %v981_v32, %v905_v40  ;;  %v830_v48 = vadd.f32 %v829_v39, %v2887_v46  ;;  %v909_v49 = vmul.f32 %v2887_v46, %v2887_v46  ;;  %v2566_v40 = vld [vmem:[#allocation8 + $0x94] ss:$8 sps:$4 sm:$0xff]  }
 0x158   :  { %v962_v50 = vadd.f32 %v961_v43, %v908_v45  ;;  %v2568_v45 = vld [vmem:[#allocation8 + $0x90] ss:$8 sps:$4 sm:$0xff]   ;;  %1833 = vmatprep.subr.bf16.mxu0 %v2566_v40 }
 0x159   :  { %v983_v52 = vadd.f32 %v982_v47, %v909_v49  ;;  %1834 = vmatpush1.bf16.msra.mxu0 %v2568_v45 }
 0x15b   :  { %v2892_v54 = vpop.f32.mrb[8].mxu1 }
 0x15c   :  { %v810_v55 = vadd.f32 %v809_v44, %v2892_v54  ;;  %v912_v56 = vmul.f32 %v2892_v54, %v2892_v54  ;;  %v2897_v57 = vpop.f32.mrb[9].mxu1 }
 0x15d   :  { %v831_v58 = vadd.f32 %v830_v48, %v2897_v57  ;;  %v913_v59 = vmul.f32 %v2897_v57, %v2897_v57  ;;  %v2902_v60 = vpop.f32.mrb[10].mxu1 }
 0x15e   :  { %v963_v63 = vadd.f32 %v962_v50, %v912_v56  ;;  %v811_v0 = vadd.f32 %v810_v55, %v2902_v60  ;;  %v916_v1 = vmul.f32 %v2902_v60, %v2902_v60  ;;  %v2907_v2 = vpop.f32.mrb[11].mxu1  ;;  %v2569_v56 = vld [vmem:[#allocation8 + $0xa4] ss:$8 sps:$4 sm:$0xff]  }
 0x15f   :  { %v984_v3 = vadd.f32 %v983_v52, %v913_v59  ;;  %v832_v4 = vadd.f32 %v831_v58, %v2907_v2  ;;  %v917_v5 = vmul.f32 %v2907_v2, %v2907_v2  ;;  %v2571_v59 = vld [vmem:[#allocation8 + $0xa0] ss:$8 sps:$4 sm:$0xff]   ;;  %1835 = vmatprep.subr.bf16.mxu0 %v2569_v56 }
 0x160   :  { %v964_v6 = vadd.f32 %v963_v63, %v916_v1  ;;  %1836 = vmatpush1.bf16.msra.mxu0 %v2571_v59  ;;  %v2572_v1 = vld [vmem:[#allocation8 + $0xb4] ss:$8 sps:$4 sm:$0xff]  }
 0x161   :  { %v985_v8 = vadd.f32 %v984_v3, %v917_v5  ;;  %1837 = vmatprep.subr.bf16.mxu0 %v2572_v1 }
 0x163   :  { %v2912_v10 = vpop.f32.mrb[12].mxu1 }
 0x164   :  { %v812_v11 = vadd.f32 %v811_v0, %v2912_v10  ;;  %v920_v12 = vmul.f32 %v2912_v10, %v2912_v10  ;;  %v2917_v14 = vpop.f32.mrb[13].mxu1 }
 0x165   :  { %v833_v16 = vadd.f32 %v832_v4, %v2917_v14  ;;  %v921_v13 = vmul.f32 %v2917_v14, %v2917_v14  ;;  %v2922_v17 = vpop.f32.mrb[14].mxu1 }
 0x166   :  { %v965_v22 = vadd.f32 %v964_v6, %v920_v12  ;;  %v813_v23 = vadd.f32 %v812_v11, %v2922_v17  ;;  %v924_v24 = vmul.f32 %v2922_v17, %v2922_v17  ;;  %v2927_v25 = vpop.f32.mrb[15].mxu1  ;;  %v2574_v6 = vld [vmem:[#allocation8 + $0xb0] ss:$8 sps:$4 sm:$0xff]  }
 0x167   :  { %v986_v27 = vadd.f32 %v985_v8, %v921_v13  ;;  %v834_v28 = vadd.f32 %v833_v16, %v2927_v25  ;;  %v925_v29 = vmul.f32 %v2927_v25, %v2927_v25  ;;  %1838 = vmatpush1.bf16.msra.mxu0 %v2574_v6 }
 0x168   :  { %v966_v30 = vadd.f32 %v965_v22, %v924_v24  ;;  %1839 = vmatprep.subr.bf16.mxu0 %v2575_v20 }
 0x169   :  { %v987_v32 = vadd.f32 %v986_v27, %v925_v29 }
 0x16b   :  { %v2932_v35 = vpop.f32.mrb[16].mxu1 }
 0x16c   :  { %v814_v36 = vadd.f32 %v813_v23, %v2932_v35  ;;  %v928_v38 = vmul.f32 %v2932_v35, %v2932_v35  ;;  %v2937_v39 = vpop.f32.mrb[17].mxu1  ;;  %v2577_v23 = vld [vmem:[#allocation8 + $0xc0] ss:$8 sps:$4 sm:$0xff]  }
 0x16d   :  { %v835_v42 = vadd.f32 %v834_v28, %v2937_v39  ;;  %v929_v43 = vmul.f32 %v2937_v39, %v2937_v39  ;;  %v2942_v44 = vpop.f32.mrb[18].mxu1  ;;  %1840 = vmatpush1.bf16.msra.mxu0 %v2577_v23 }
 0x16e   :  { %v967_v47 = vadd.f32 %v966_v30, %v928_v38  ;;  %v815_v48 = vadd.f32 %v814_v36, %v2942_v44  ;;  %v932_v49 = vmul.f32 %v2942_v44, %v2942_v44  ;;  %v2947_v50 = vpop.f32.mrb[19].mxu1  ;;  %v2578_v30 = vld [vmem:[#allocation8 + $0xd4] ss:$8 sps:$4 sm:$0xff]   ;;  %v2580_v36 = vld [vmem:[#allocation8 + $0xd0] ss:$8 sps:$4 sm:$0xff]  }
 0x16f   :  { %v988_v51 = vadd.f32 %v987_v32, %v929_v43  ;;  %v836_v52 = vadd.f32 %v835_v42, %v2947_v50  ;;  %v933_v53 = vmul.f32 %v2947_v50, %v2947_v50  ;;  %1841 = vmatprep.subr.bf16.mxu0 %v2578_v30 }
 0x170   :  { %v968_v55 = vadd.f32 %v967_v47, %v932_v49 }
 0x171   :  { %v989_v58 = vadd.f32 %v988_v51, %v933_v53  ;;  %1842 = vmatpush1.bf16.msra.mxu0 %v2580_v36  ;;  %v2581_v51 = vld [vmem:[#allocation8 + $0xe4] ss:$8 sps:$4 sm:$0xff]   ;;  %v2583_v53 = vld [vmem:[#allocation8 + $0xe0] ss:$8 sps:$4 sm:$0xff]  }
 0x172   :  { %1843 = vmatprep.subr.bf16.mxu0 %v2581_v51 }
 0x173   :  { %v2952_v61 = vpop.f32.mrb[20].mxu1 }
 0x174   :  { %v816_v62 = vadd.f32 %v815_v48, %v2952_v61  ;;  %v936_v63 = vmul.f32 %v2952_v61, %v2952_v61  ;;  %v2957_v0 = vpop.f32.mrb[21].mxu1 }
 0x175   :  { %v837_v3 = vadd.f32 %v836_v52, %v2957_v0  ;;  %v937_v4 = vmul.f32 %v2957_v0, %v2957_v0  ;;  %v2962_v5 = vpop.f32.mrb[22].mxu1  ;;  %1844 = vmatpush1.bf16.msra.mxu0 %v2583_v53 }
 0x176   :  { %v969_v7 = vadd.f32 %v968_v55, %v936_v63  ;;  %v817_v8 = vadd.f32 %v816_v62, %v2962_v5  ;;  %v940_v9 = vmul.f32 %v2962_v5, %v2962_v5  ;;  %v2967_v11 = vpop.f32.mrb[23].mxu1  ;;  %v2584_v62 = vld [vmem:[#allocation8 + $0xf4] ss:$8 sps:$4 sm:$0xff]  }
 0x177   :  { %v990_v12 = vadd.f32 %v989_v58, %v937_v4  ;;  %v838_v15 = vadd.f32 %v837_v3, %v2967_v11  ;;  %v941_v16 = vmul.f32 %v2967_v11, %v2967_v11  ;;  %v2586_v4 = vld [vmem:[#allocation8 + $0xf0] ss:$8 sps:$4 sm:$0xff]   ;;  %1845 = vmatprep.subr.bf16.mxu0 %v2584_v62 }
 0x178   :  { %v970_v13 = vadd.f32 %v969_v7, %v940_v9 }
 0x179   :  { %v991_v22 = vadd.f32 %v990_v12, %v941_v16  ;;  %1846 = vmatpush1.bf16.msra.mxu0 %v2586_v4 }
 0x17b   :  { %v2972_v24 = vpop.f32.mrb[24].mxu1 }
 0x17c   :  { %v818_v27 = vadd.f32 %v817_v8, %v2972_v24  ;;  %v944_v28 = vmul.f32 %v2972_v24, %v2972_v24  ;;  %v2977_v29 = vpop.f32.mrb[25].mxu1 }
 0x17d   :  { %v839_v31 = vadd.f32 %v838_v15, %v2977_v29  ;;  %v945_v32 = vmul.f32 %v2977_v29, %v2977_v29  ;;  %v2982_v33 = vpop.f32.mrb[26].mxu1 }
 0x17e   :  { %v971_v38 = vadd.f32 %v970_v13, %v944_v28  ;;  %v819_v40 = vadd.f32 %v818_v27, %v2982_v33  ;;  %v948_v42 = vmul.f32 %v2982_v33, %v2982_v33  ;;  %v2987_v43 = vpop.f32.mrb[27].mxu1  ;;  %v2589_v27 = vld [vmem:[#allocation8 + $0x104] ss:$8 sps:$4 sm:$0xff]  }
 0x17f   :  { %v992_v45 = vadd.f32 %v991_v22, %v945_v32  ;;  %v840_v47 = vadd.f32 %v839_v31, %v2987_v43  ;;  %v949_v48 = vmul.f32 %v2987_v43, %v2987_v43  ;;  %1928 = vmatprep.subr.bf16.mxu0 %v2589_v27 }
 0x180   :  { %v972_v49 = vadd.f32 %v971_v38, %v948_v42 }
 0x181   :  { %v993_v52 = vadd.f32 %v992_v45, %v949_v48 }
 0x183   :  { %v2992_v55 = vpop.f32.mrb[28].mxu1 }
 0x184   :  { %v820_v56 = vadd.f32 %v819_v40, %v2992_v55  ;;  %v952_v58 = vmul.f32 %v2992_v55, %v2992_v55  ;;  %v2997_v59 = vpop.f32.mrb[29].mxu1 }
 0x185   :  { %v841_v63 = vadd.f32 %v840_v47, %v2997_v59  ;;  %v953_v1 = vmul.f32 %v2997_v59, %v2997_v59  ;;  %v3002_v3 = vpop.f32.mrb[30].mxu1 }
 0x186   :  { %v973_v6 = vadd.f32 %v972_v49, %v952_v58  ;;  %v821_v7 = vadd.f32 %v820_v56, %v3002_v3  ;;  %v956_v8 = vmul.f32 %v3002_v3, %v3002_v3  ;;  %v3007_v9 = vpop.f32.mrb[31].mxu1 }
 0x187   :  { %v994_v12 = vadd.f32 %v993_v52, %v953_v1  ;;  %v842_v15 = vadd.f32 %v841_v63, %v3007_v9  ;;  %v957_v16 = vmul.f32 %v3007_v9, %v3007_v9 }
 0x188   :  { %v822_v13 = vrot.slane %v821_v7, 4  ;;  %v974_v20 = vadd.f32 %v973_v6, %v956_v8 }
 0x189   :  { %v843_v22 = vrot.slane %v842_v15, 4  ;;  %v995_v23 = vadd.f32 %v994_v12, %v957_v16 }
 0x18a   :  { %v823_v28 = vadd.f32 %v822_v13, %v821_v7  ;;  %v975_v30 = vrot.slane %v974_v20, 4 }
 0x18b   :  { %v844_v31 = vadd.f32 %v843_v22, %v842_v15  ;;  %v996_v32 = vrot.slane %v995_v23, 4  ;;  %v3012_v36 = vpop.f32.mrb[32].mxu1 }
 0x18c   :  { %3643 = vst [vmem:[#allocation13_spill] sm:$0xff] %v3012_v36  ;;  %v824_v38 = vrot.slane %v823_v28, 2  ;;  %v976_v40 = vadd.f32 %v975_v30, %v974_v20  ;;  %v3014_v42 = vpop.f32.mrb[33].mxu1  ;;  %v898_v48 = vmul.f32 %v3012_v36, %v3012_v36 }
 0x18d   :  { %3644 = vst [vmem:[#allocation14_spill] sm:$0xff] %v3014_v42  ;;  %v845_v45 = vrot.slane %v844_v31, 2  ;;  %v997_v47 = vadd.f32 %v996_v32, %v995_v23  ;;  %v899_v49 = vmul.f32 %v3014_v42, %v3014_v42  ;;  %v3020_v51 = vpop.f32.mrb[34].mxu1 }
 0x18e   :  { %3645 = vst [vmem:[#allocation15_spill] sm:$0xff] %v3020_v51  ;;  %v825_v52 = vadd.f32 %v824_v38, %v823_v28  ;;  %v977_v53 = vrot.slane %v976_v40, 2  ;;  %v849_v56 = vadd.f32 %v3020_v51, %v3012_v36  ;;  %v902_v58 = vmul.f32 %v3020_v51, %v3020_v51  ;;  %v3026_v62 = vpop.f32.mrb[35].mxu1 }
 0x18f   :  { %3646 = vst [vmem:[#allocation16_spill] sm:$0xff] %v3026_v62  ;;  %v846_v63 = vadd.f32 %v845_v45, %v844_v31  ;;  %v998_v1 = vrot.slane %v997_v47, 2  ;;  %v870_v4 = vadd.f32 %v3026_v62, %v3014_v42  ;;  %v903_v6 = vmul.f32 %v3026_v62, %v3026_v62 }
 0x190   :  { %v826_v7 = vrot.slane %v825_v52, 1  ;;  %v978_v8 = vadd.f32 %v977_v53, %v976_v40  ;;  %v1002_v12 = vadd.f32 %v902_v58, %v898_v48 }
 0x191   :  { %v847_v15 = vrot.slane %v846_v63, 1  ;;  %v999_v16 = vadd.f32 %v998_v1, %v997_v47  ;;  %v1023_v13 = vadd.f32 %v903_v6, %v899_v49 }
 0x192   :  { %v827_v20 = vadd.f32 %v826_v7, %v825_v52  ;;  %v979_v22 = vrot.slane %v978_v8, 1 }
 0x193   :  { %v848_v23 = vadd.f32 %v847_v15, %v846_v63  ;;  %v1000_v27 = vrot.slane %v999_v16, 1  ;;  %v3032_v28 = vpop.f32.mrb[36].mxu1 }
 0x194   :  { %3647 = vst [vmem:[#allocation17_spill] sm:$0xff] %v3032_v28  ;;  %v3034_v30 = vmul.f32 0.0078125, %v827_v20  ;;  %v980_v31 = vadd.f32 %v979_v22, %v978_v8  ;;  %v850_v32 = vadd.f32 %v849_v56, %v3032_v28  ;;  %v906_v38 = vmul.f32 %v3032_v28, %v3032_v28  ;;  %v3039_v45 = vpop.f32.mrb[37].mxu1 }
 0x195   :  { %3648 = vst [vmem:[#allocation18_spill] sm:$0xff] %v3039_v45  ;;  %v3041_v40 = vmul.f32 0.0078125, %v848_v23  ;;  %v1001_v47 = vadd.f32 %v1000_v27, %v999_v16  ;;  %v871_v48 = vadd.f32 %v870_v4, %v3039_v45  ;;  %v907_v49 = vmul.f32 %v3039_v45, %v3039_v45  ;;  %v3046_v52 = vpop.f32.mrb[38].mxu1 }
 0x196   :  { %3649 = vst [vmem:[#allocation19_spill] sm:$0xff] %v3046_v52  ;;  %v1044_v53 = vmul.f32 0.0078125, %v980_v31  ;;  %v1048_v58 = vmul.f32 %v3034_v30, %v3034_v30  ;;  %v1003_v56 = vadd.f32 %v1002_v12, %v906_v38  ;;  %v851_v63 = vadd.f32 %v850_v32, %v3046_v52  ;;  %v3051_v1 = vpop.f32.mrb[39].mxu1 }
 0x197   :  { %3650 = vst [vmem:[#allocation20_spill] sm:$0xff] %v3051_v1  ;;  %v1045_v6 = vmul.f32 0.0078125, %v1001_v47  ;;  %v1049_v7 = vmul.f32 %v3041_v40, %v3041_v40  ;;  %v1024_v8 = vadd.f32 %v1023_v13, %v907_v49  ;;  %v910_v4 = vmul.f32 %v3046_v52, %v3046_v52 }
 0x198   :  { %v1052_v15 = vsub.f32 %v1044_v53, %v1048_v58  ;;  %v872_v16 = vadd.f32 %v871_v48, %v3051_v1  ;;  %v911_v20 = vmul.f32 %v3051_v1, %v3051_v1 }
 0x199   :  { %v1053_v22 = vsub.f32 %v1045_v6, %v1049_v7  ;;  %v1004_v12 = vadd.f32 %v1003_v56, %v910_v4 }
 0x19a   :  { %v1061_v23 = vadd.f32 1e-05, %v1052_v15  ;;  %v1025_v27 = vadd.f32 %v1024_v8, %v911_v20 }
 0x19b   :  { %v1062_v31 = vadd.f32 1e-05, %v1053_v22  ;;  %v3060_v32 = vpop.f32.mrb[40].mxu1 }
 0x19c   :  { %3651 = vst [vmem:[#allocation21_spill] sm:$0xff] %v3060_v32  ;;  %2635 = vrsqrt.f32 %v1061_v23  ;;  %v852_v38 = vadd.f32 %v851_v63, %v3060_v32  ;;  %v914_v13 = vmul.f32 %v3060_v32, %v3060_v32  ;;  %v3065_v47 = vpop.f32.mrb[41].mxu1 }
 0x19d   :  { %3652 = vst [vmem:[#allocation22_spill] sm:$0xff] %v3065_v47  ;;  %2637 = vrsqrt.f32 %v1062_v31  ;;  %v873_v48 = vadd.f32 %v872_v16, %v3065_v47  ;;  %v915_v49 = vmul.f32 %v3065_v47, %v3065_v47  ;;  %v3070_v53 = vpop.f32.mrb[42].mxu1 }
 0x19e   :  { %3653 = vst [vmem:[#allocation23_spill] sm:$0xff] %v3070_v53  ;;  %v1005_v58 = vadd.f32 %v1004_v12, %v914_v13  ;;  %v853_v56 = vadd.f32 %v852_v38, %v3070_v53  ;;  %v918_v6 = vmul.f32 %v3070_v53, %v3070_v53  ;;  %v3075_v63 = vpop.f32.mrb[43].mxu1 }
 0x19f   :  { %3654 = vst [vmem:[#allocation24_spill] sm:$0xff] %v3075_v63  ;;  %v1026_v7 = vadd.f32 %v1025_v27, %v915_v49  ;;  %v874_v8 = vadd.f32 %v873_v48, %v3075_v63  ;;  %v919_v4 = vmul.f32 %v3075_v63, %v3075_v63 }
 0x1a0   :  { %v1006_v15 = vadd.f32 %v1005_v58, %v918_v6 }
 0x1a1   :  { %v1027_v16 = vadd.f32 %v1026_v7, %v919_v4 }
 0x1a3   :  { %v3080_v20 = vpop.f32.mrb[44].mxu1 }
 0x1a4   :  { %3655 = vst [vmem:[#allocation25_spill] sm:$0xff] %v3080_v20  ;;  %v854_v22 = vadd.f32 %v853_v56, %v3080_v20  ;;  %v922_v12 = vmul.f32 %v3080_v20, %v3080_v20  ;;  %v3085_v23 = vpop.f32.mrb[45].mxu1 }
 0x1a5   :  { %3656 = vst [vmem:[#allocation26_spill] sm:$0xff] %v3085_v23  ;;  %v875_v31 = vadd.f32 %v874_v8, %v3085_v23  ;;  %v923_v27 = vmul.f32 %v3085_v23, %v3085_v23  ;;  %v3090_v38 = vpop.f32.mrb[46].mxu1 }
 0x1a6   :  { %3657 = vst [vmem:[#allocation27_spill] sm:$0xff] %v3090_v38  ;;  %v3092_v13 = vpop.eup %2635  ;;  %v1007_v48 = vadd.f32 %v1006_v15, %v922_v12  ;;  %v855_v49 = vadd.f32 %v854_v22, %v3090_v38  ;;  %v926_v58 = vmul.f32 %v3090_v38, %v3090_v38  ;;  %v3097_v56 = vpop.f32.mrb[47].mxu1 }
 0x1a7   :  { %3658 = vst [vmem:[#allocation28_spill] sm:$0xff] %v3097_v56  ;;  %v3099_v6 = vpop.eup %2637  ;;  %v1028_v7 = vadd.f32 %v1027_v16, %v923_v27  ;;  %v876_v8 = vadd.f32 %v875_v31, %v3097_v56  ;;  %v927_v4 = vmul.f32 %v3097_v56, %v3097_v56 }
 0x1a8   :  { %v1008_v23 = vadd.f32 %v1007_v48, %v926_v58 }
 0x1a9   :  { %v1029_v15 = vadd.f32 %v1028_v7, %v927_v4 }
 0x1ab   :  { %v3106_v12 = vpop.f32.mrb[48].mxu1 }
 0x1ac   :  { %3659 = vst [vmem:[#allocation29_spill] sm:$0xff] %v3106_v12  ;;  %v856_v22 = vadd.f32 %v855_v49, %v3106_v12  ;;  %v930_v38 = vmul.f32 %v3106_v12, %v3106_v12  ;;  %v3111_v53 = vpop.f32.mrb[49].mxu1 }
 0x1ad   :  { %3660 = vst [vmem:[#allocation30_spill] sm:$0xff] %v3111_v53  ;;  %v877_v16 = vadd.f32 %v876_v8, %v3111_v53  ;;  %v931_v31 = vmul.f32 %v3111_v53, %v3111_v53  ;;  %v3116_v27 = vpop.f32.mrb[50].mxu1 }
 0x1ae   :  { %3661 = vst [vmem:[#allocation31_spill] sm:$0xff] %v3116_v27  ;;  %v1009_v56 = vadd.f32 %v1008_v23, %v930_v38  ;;  %v857_v48 = vadd.f32 %v856_v22, %v3116_v27  ;;  %v934_v58 = vmul.f32 %v3116_v27, %v3116_v27  ;;  %v3121_v7 = vpop.f32.mrb[51].mxu1 }
 0x1af   :  { %3662 = vst [vmem:[#allocation32_spill] sm:$0xff] %v3121_v7  ;;  %v1030_v49 = vadd.f32 %v1029_v15, %v931_v31  ;;  %v878_v4 = vadd.f32 %v877_v16, %v3121_v7  ;;  %v935_v20 = vmul.f32 %v3121_v7, %v3121_v7 }
 0x1b0   :  { %v1010_v8 = vadd.f32 %v1009_v56, %v934_v58 }
 0x1b1   :  { %v1031_v12 = vadd.f32 %v1030_v49, %v935_v20 }
 0x1b3   :  { %v3126_v32 = vpop.f32.mrb[52].mxu1 }
 0x1b4   :  { %3663 = vst [vmem:[#allocation33_spill] sm:$0xff] %v3126_v32  ;;  %v858_v53 = vadd.f32 %v857_v48, %v3126_v32  ;;  %v938_v23 = vmul.f32 %v3126_v32, %v3126_v32  ;;  %v3131_v38 = vpop.f32.mrb[53].mxu1 }
 0x1b5   :  { %3664 = vst [vmem:[#allocation34_spill] sm:$0xff] %v3131_v38  ;;  %v879_v22 = vadd.f32 %v878_v4, %v3131_v38  ;;  %v939_v15 = vmul.f32 %v3131_v38, %v3131_v38  ;;  %v3136_v16 = vpop.f32.mrb[54].mxu1 }
 0x1b6   :  { %3665 = vst [vmem:[#allocation35_spill] sm:$0xff] %v3136_v16  ;;  %v1011_v31 = vadd.f32 %v1010_v8, %v938_v23  ;;  %v859_v56 = vadd.f32 %v858_v53, %v3136_v16  ;;  %v942_v20 = vmul.f32 %v3136_v16, %v3136_v16  ;;  %v3141_v58 = vpop.f32.mrb[55].mxu1 }
 0x1b7   :  { %3666 = vst [vmem:[#allocation36_spill] sm:$0xff] %v3141_v58  ;;  %v1032_v48 = vadd.f32 %v1031_v12, %v939_v15  ;;  %v880_v49 = vadd.f32 %v879_v22, %v3141_v58  ;;  %v943_v32 = vmul.f32 %v3141_v58, %v3141_v58 }
 0x1b8   :  { %v1012_v4 = vadd.f32 %v1011_v31, %v942_v20 }
 0x1b9   :  { %v1033_v27 = vadd.f32 %v1032_v48, %v943_v32 }
 0x1bb   :  { %v3146_v7 = vpop.f32.mrb[56].mxu1 }
 0x1bc   :  { %3667 = vst [vmem:[#allocation37_spill] sm:$0xff] %v3146_v7  ;;  %v860_v38 = vadd.f32 %v859_v56, %v3146_v7  ;;  %v946_v53 = vmul.f32 %v3146_v7, %v3146_v7  ;;  %v3151_v8 = vpop.f32.mrb[57].mxu1 }
 0x1bd   :  { %3668 = vst [vmem:[#allocation38_spill] sm:$0xff] %v3151_v8  ;;  %v881_v23 = vadd.f32 %v880_v49, %v3151_v8  ;;  %v947_v12 = vmul.f32 %v3151_v8, %v3151_v8  ;;  %v3156_v22 = vpop.f32.mrb[58].mxu1 }
 0x1be   :  { %3669 = vst [vmem:[#allocation39_spill] sm:$0xff] %v3156_v22  ;;  %v1013_v15 = vadd.f32 %v1012_v4, %v946_v53  ;;  %v861_v31 = vadd.f32 %v860_v38, %v3156_v22  ;;  %v950_v32 = vmul.f32 %v3156_v22, %v3156_v22  ;;  %v3161_v20 = vpop.f32.mrb[59].mxu1 }
 0x1bf   :  { %3670 = vst [vmem:[#allocation40_spill] sm:$0xff] %v3161_v20  ;;  %v1034_v56 = vadd.f32 %v1033_v27, %v947_v12  ;;  %v882_v48 = vadd.f32 %v881_v23, %v3161_v20  ;;  %v951_v7 = vmul.f32 %v3161_v20, %v3161_v20 }
 0x1c0   :  { %v1014_v49 = vadd.f32 %v1013_v15, %v950_v32 }
 0x1c1   :  { %v1035_v16 = vadd.f32 %v1034_v56, %v951_v7 }
 0x1c3   :  { %v3166_v58 = vpop.f32.mrb[60].mxu1 }
 0x1c4   :  { %3671 = vst [vmem:[#allocation41_spill] sm:$0xff] %v3166_v58  ;;  %v862_v8 = vadd.f32 %v861_v31, %v3166_v58  ;;  %v954_v38 = vmul.f32 %v3166_v58, %v3166_v58  ;;  %v3171_v4 = vpop.f32.mrb[61].mxu1 }
 0x1c5   :  { %3672 = vst [vmem:[#allocation42_spill] sm:$0xff] %v3171_v4  ;;  %v883_v53 = vadd.f32 %v882_v48, %v3171_v4  ;;  %v955_v27 = vmul.f32 %v3171_v4, %v3171_v4  ;;  %v3176_v23 = vpop.f32.mrb[62].mxu1 }
 0x1c6   :  { %3673 = vst [vmem:[#allocation43_spill] sm:$0xff] %v3176_v23  ;;  %v1015_v12 = vadd.f32 %v1014_v49, %v954_v38  ;;  %v863_v15 = vadd.f32 %v862_v8, %v3176_v23  ;;  %v958_v7 = vmul.f32 %v3176_v23, %v3176_v23  ;;  %v3181_v32 = vpop.f32.mrb[63].mxu1 }
 0x1c7   :  { %v1036_v31 = vadd.f32 %v1035_v16, %v955_v27  ;;  %v884_v56 = vadd.f32 %v883_v53, %v3181_v32  ;;  %v959_v58 = vmul.f32 %v3181_v32, %v3181_v32 }
 0x1c8   :  { %v864_v48 = vrot.slane %v863_v15, 4  ;;  %v1016_v22 = vadd.f32 %v1015_v12, %v958_v7 }
 0x1c9   :  { %v885_v20 = vrot.slane %v884_v56, 4  ;;  %v1037_v4 = vadd.f32 %v1036_v31, %v959_v58 }
 0x1ca   :  { %v865_v63 = vadd.f32 %v864_v48, %v863_v15  ;;  %v1017_v47 = vrot.slane %v1016_v22, 4 }
 0x1cb   :  { %v886_v49 = vadd.f32 %v885_v20, %v884_v56  ;;  %v1038_v38 = vrot.slane %v1037_v4, 4 }
 0x1cc   :  { %v866_v8 = vrot.slane %v865_v63, 2  ;;  %v1018_v52 = vadd.f32 %v1017_v47, %v1016_v22 }
 0x1cd   :  { %v887_v28 = vrot.slane %v886_v49, 2  ;;  %v1039_v23 = vadd.f32 %v1038_v38, %v1037_v4 }
 0x1ce   :  { %v867_v1 = vadd.f32 %v866_v8, %v865_v63  ;;  %v1019_v45 = vrot.slane %v1018_v52, 2 }
 0x1cf   :  { %v888_v16 = vadd.f32 %v887_v28, %v886_v49  ;;  %v1040_v27 = vrot.slane %v1039_v23, 2 }
 0x1d0   :  { %v868_v53 = vrot.slane %v867_v1, 1  ;;  %v1020_v51 = vadd.f32 %v1019_v45, %v1018_v52  ;;  %v2744_v45 = vmov 1966171168  }
 0x1d1   :  { %v889_v36 = vrot.slane %v888_v16, 1  ;;  %v1041_v62 = vadd.f32 %v1040_v27, %v1039_v23  ;;  %v1076_v52 = vunpack.c.l.s4 %v2744_v45 }
 0x1d2   :  { %v869_v42 = vadd.f32 %v868_v53, %v867_v1  ;;  %v1021_v12 = vrot.slane %v1020_v51, 1  ;;  %v1078_v1 = vlaneseq }
 0x1d3   :  { %v890_v7 = vadd.f32 %v889_v36, %v888_v16  ;;  %v1042_v58 = vrot.slane %v1041_v62, 1  ;;  %v1077_v23 = vunpack.c.0.s8 %v1076_v52  ;;  %v3674_v16 = vcombine.low %v3092_v13, %v3099_v6 }
 0x1d4   :  { %v894_v15 = vmul.f32 0.0078125, %v869_v42  ;;  %v1022_v31 = vadd.f32 %v1021_v12, %v1020_v51  ;;  %v3186_v36 = vshrl.u32 %v1078_v1, 7 }
 0x1d5   :  { %v895_v20 = vmul.f32 0.0078125, %v890_v7  ;;  %v1043_v56 = vadd.f32 %v1042_v58, %v1041_v62  ;;  %v1058_v7 = vld [vmem:[%s3605_s2] sm:$0xf] }
 0x1d6   :  { %v1046_v48 = vmul.f32 0.0078125, %v1022_v31  ;;  %v1050_v47 = vmul.f32 %v894_v15, %v894_v15  ;;  %v1080_v51 = vsub.s32 %v1077_v23, %v3186_v36  ;;  %v3196_v58 = vsub.s32 0, %v3186_v36 }
 0x1d7   :  { %v1047_v22 = vmul.f32 0.0078125, %v1043_v56  ;;  %v1051_v4 = vmul.f32 %v895_v20, %v895_v20  ;;  %v3199_v56 = vsub.s32 1, %v3186_v36 }
 0x1d8   :  { %v1054_v63 = vsub.f32 %v1046_v48, %v1050_v47  ;;  %v1081_v27 = vrot.slane %v3674_v16, %v1080_v51  ;;  %3675 = vst [vmem:[#allocation44_spill] sm:$0xff] %v3196_v58  ;;  %v1110_v48 = vsub.s32 2, %v3186_v36  ;;  %v1114_v47 = vsub.s32 3, %v3186_v36 }
 0x1d9   :  { %v1055_v38 = vsub.f32 %v1047_v22, %v1051_v4  ;;  %3676 = vst [vmem:[#allocation45_spill] sm:$0xff] %v3199_v56 }
 0x1da   :  { %v1063_v28 = vadd.f32 1e-05, %v1054_v63 }
 0x1db   :  { %v1064_v49 = vadd.f32 1e-05, %v1055_v38 }
 0x1dc   :  { %2639 = vrsqrt.f32 %v1063_v28 }
 0x1dd   :  { %2641 = vrsqrt.f32 %v1064_v49 }
 0x1e6   :  { %v2640_v42 = vpop.eup %2639 }
 0x1e7   :  { %v2642_v62 = vpop.eup %2641 }
 0x1e8   :  { %v1074_v8 = vcombine.low %v2640_v42, %v2642_v62 }
 0x1ea   :  { %v1088_v53 = vrot.slane %v1074_v8, %v1080_v51 }
 0x1ec   :  { %v1089_v12 = vcombine.low %v1081_v27, %v1088_v53 }
 0x1ee   :  { %v1096_v31 = vrot.slane %v1089_v12, %v1080_v51  ;;  %v3678_v12 = vld [vmem:[#allocation16_spill] sm:$0xff] }
 0x1f0   :  { %v1098_v22 = vmul.f32 %v1096_v31, %v1058_v7 }
 0x1f2   :  { %v1103_v13 = vrot.slane %v1098_v22, %v3196_v58  ;;  %v1107_v6 = vrot.slane %v1098_v22, %v3199_v56  ;;  %v3205_v4 = vrot.slane %v1098_v22, %v1110_v48  ;;  %v3207_v63 = vrot.slane %v1098_v22, %v1114_v47 }
 0x1f4   :  { %v1120_v38 = vmul.f32 %v1103_v13, %v3034_v30  ;;  %v1121_v28 = vmul.f32 %v1107_v6, %v3041_v40  ;;  %v1122_v49 = vmul.f32 %v3205_v4, %v894_v15  ;;  %v1123_v45 = vmul.f32 %v3207_v63, %v895_v20 }
 0x1f5   :  { %v1217_v52 = vmul.f32 %v3207_v63, %v3181_v32  ;;  %v1155_v1 = vmul.f32 %v1107_v6, %v2854_v19  ;;  %v1159_v23 = vmul.f32 %v1107_v6, %v2864_v26  ;;  %v1154_v36 = vmul.f32 %v1103_v13, %v2852_v18 }
 0x1f6   :  { %v1128_v42 = vcombine.low %v1120_v38, %v1121_v28  ;;  %v1129_v62 = vcombine.low %v1122_v49, %v1123_v45  ;;  %v1158_v8 = vmul.f32 %v1103_v13, %v2856_v21  ;;  %v1163_v30 = vmul.f32 %v1107_v6, %v2877_v37  ;;  %v3682_v28 = vld [vmem:[#allocation20_spill] sm:$0xff]  ;;  %v3683_v45 = vld [vmem:[#allocation17_spill] sm:$0xff] }
 0x1f7   :  { %v1167_v40 = vmul.f32 %v1107_v6, %v2887_v46  ;;  %v1162_v15 = vmul.f32 %v1103_v13, %v2872_v34  ;;  %v1166_v20 = vmul.f32 %v1103_v13, %v2882_v41  ;;  %v1171_v32 = vmul.f32 %v1107_v6, %v2897_v57 }
 0x1f8   :  { %v1136_v16 = vrot.slane %v1128_v42, %v1080_v51  ;;  %v1143_v19 = vrot.slane %v1129_v62, %v1080_v51  ;;  %v1175_v26 = vmul.f32 %v1107_v6, %v2907_v2  ;;  %v3226_v18 = vmul.f32 %v1103_v13, %v2892_v54  ;;  %v3684_v62 = vld [vmem:[#allocation19_spill] sm:$0xff] }
 0x1f9   :  { %v3229_v27 = vmul.f32 %v1103_v13, %v2902_v60  ;;  %v3232_v21 = vmul.f32 %v1107_v6, %v2917_v14  ;;  %v3235_v37 = vmul.f32 %v1107_v6, %v2927_v25  ;;  %v3238_v34 = vmul.f32 %v1103_v13, %v2912_v10  ;;  %v1060_v60 = vld [vmem:[%s3606_s3] sm:$0xf] }
 0x1fa   :  { %v1144_v41 = vcombine.low %v1136_v16, %v1143_v19  ;;  %v3241_v46 = vmul.f32 %v1103_v13, %v2922_v17  ;;  %v3244_v57 = vmul.f32 %v1107_v6, %v2937_v39  ;;  %v3247_v54 = vmul.f32 %v1107_v6, %v2947_v50 }
 0x1fb   :  { %v3253_v2 = vmul.f32 %v1103_v13, %v2932_v35  ;;  %v3256_v10 = vmul.f32 %v1103_v13, %v2942_v44  ;;  %v3259_v14 = vmul.f32 %v1107_v6, %v2957_v0  ;;  %v3262_v17 = vmul.f32 %v1107_v6, %v2967_v11 }
 0x1fc   :  { %v1151_v25 = vrot.slane %v1144_v41, %v1080_v51  ;;  %v3265_v39 = vmul.f32 %v1103_v13, %v2952_v61  ;;  %v3268_v50 = vmul.f32 %v1103_v13, %v2962_v5  ;;  %v3271_v53 = vmul.f32 %v1107_v6, %v2977_v29 }
 0x1fd   :  { %v3274_v35 = vmul.f32 %v1107_v6, %v2987_v43  ;;  %v3277_v44 = vmul.f32 %v1103_v13, %v2972_v24  ;;  %v3280_v0 = vmul.f32 %v1103_v13, %v2982_v33  ;;  %v3283_v11 = vmul.f32 %v1107_v6, %v2997_v59  ;;  %v3677_v43 = vld [vmem:[#allocation14_spill] sm:$0xff]  ;;  %v3679_v59 = vld [vmem:[#allocation13_spill] sm:$0xff] }
 0x1fe   :  { %v1153_v61 = vsub.f32 %v1060_v60, %v1151_v25  ;;  %v3286_v51 = vmul.f32 %v1107_v6, %v3007_v9  ;;  %v3289_v5 = vmul.f32 %v1103_v13, %v2992_v55  ;;  %v3292_v29 = vmul.f32 %v1103_v13, %v3002_v3  ;;  %v3680_v9 = vld [vmem:[#allocation15_spill] sm:$0xff]  ;;  %v3681_v6 = vld [vmem:[#allocation18_spill] sm:$0xff] }
 0x1ff   :  { %v3296_v24 = vmul.f32 %v3207_v63, %v3677_v43  ;;  %v3300_v33 = vmul.f32 %v3207_v63, %v3678_v12  ;;  %v3304_v7 = vmul.f32 %v3205_v4, %v3679_v59  ;;  %v3308_v31 = vmul.f32 %v3205_v4, %v3680_v9 }
 0x200   :  { %v3311_v55 = vrot.slane %v1153_v61, %v3196_v58  ;;  %v3314_v3 = vrot.slane %v1153_v61, %v3199_v56  ;;  %v3316_v22 = vrot.slane %v1153_v61, %v1110_v48  ;;  %v3318_v13 = vrot.slane %v1153_v61, %v1114_v47 }
 0x201   :  { %v3322_v38 = vmul.f32 %v3207_v63, %v3681_v6  ;;  %v3326_v49 = vmul.f32 %v3207_v63, %v3682_v28  ;;  %v3330_v42 = vmul.f32 %v3205_v4, %v3683_v45  ;;  %v3334_v16 = vmul.f32 %v3205_v4, %v3684_v62 }
 0x202   :  { %v3337_v48 = vadd.f32 %v3318_v13, %v1217_v52  ;;  %v1240_v47 = vadd.f32 %v3314_v3, %v1155_v1  ;;  %v1244_v19 = vadd.f32 %v3314_v3, %v1159_v23  ;;  %v1239_v41 = vadd.f32 %v3311_v55, %v1154_v36  ;;  %v2587_v36 = vld [vmem:[#allocation8 + $0x100] ss:$8 sps:$4 sm:$0xff]  }
 0x203   :  { %v1243_v60 = vadd.f32 %v3311_v55, %v1158_v8  ;;  %v1248_v25 = vadd.f32 %v3314_v3, %v1163_v30  ;;  %v1252_v61 = vadd.f32 %v3314_v3, %v1167_v40  ;;  %v1247_v43 = vadd.f32 %v3311_v55, %v1162_v15  ;;  %v2592_v15 = vld [vmem:[#allocation8 + $0x114] ss:$8 sps:$4 sm:$0xff]  }
 0x204   :  { %v1366_v12 = vmax.f32 %v3337_v48, 0.0  ;;  %v1304_v59 = vmax.f32 %v1240_v47, 0.0  ;;  %v1308_v9 = vmax.f32 %v1244_v19, 0.0  ;;  %v1303_v52 = vmax.f32 %v1239_v41, 0.0  ;;  %v2626_v48 = vld [vmem:[#allocation8 + $0x1d0] ss:$8 sps:$4 sm:$0xff]  }
 0x205   :  { %v1307_v6 = vmax.f32 %v1243_v60, 0.0  ;;  %v1312_v28 = vmax.f32 %v1248_v25, 0.0  ;;  %v1316_v1 = vmax.f32 %v1252_v61, 0.0  ;;  %v1251_v23 = vadd.f32 %v3311_v55, %v1166_v20 }
 0x206   :  { %v1400_v45 = vpack.c.bf16 %v1308_v9, %v1304_v59  ;;  %v1311_v62 = vmax.f32 %v1247_v43, 0.0  ;;  %v1256_v8 = vadd.f32 %v3314_v3, %v1171_v32  ;;  %v1260_v30 = vadd.f32 %v3314_v3, %v1175_v26 }
 0x207   :  { %v1399_v40 = vpack.c.bf16 %v1307_v6, %v1303_v52  ;;  %v1404_v56 = vpack.c.bf16 %v1316_v1, %v1312_v28  ;;  %v1315_v58 = vmax.f32 %v1251_v23, 0.0  ;;  %v1255_v47 = vadd.f32 %v3311_v55, %v3226_v18  ;;  %v2590_v18 = vld [vmem:[#allocation8 + $0x110] ss:$8 sps:$4 sm:$0xff]  }
 0x208   :  { %1847 = vmatprep.mubr.bf16.mxu0 %v1400_v45  ;;  %v1320_v19 = vmax.f32 %v1256_v8, 0.0  ;;  %v1324_v41 = vmax.f32 %v1260_v30, 0.0  ;;  %v1259_v20 = vadd.f32 %v3311_v55, %v3229_v27  ;;  %v1264_v60 = vadd.f32 %v3314_v3, %v3232_v21  ;;  %v2595_v21 = vld [vmem:[#allocation8 + $0x124] ss:$8 sps:$4 sm:$0xff]  }
 0x209   :  { %1848 = vmatmul.mubr.bf16.vlgmr.msra.gmra.mrb[0].mxu0 %v1399_v40  ;;  %v1403_v32 = vpack.c.bf16 %v1315_v58, %v1311_v62  ;;  %v1319_v25 = vmax.f32 %v1255_v47, 0.0  ;;  %v1268_v26 = vadd.f32 %v3314_v3, %v3235_v37  ;;  %v1263_v61 = vadd.f32 %v3311_v55, %v3238_v34 }
 0x20a   :  { %1857 = vmatprep.mubr.bf16.mxu0 %v1404_v56  ;;  %1929 = vmatpush1.bf16.msra.mxu0 %v2587_v36  ;;  %v1408_v43 = vpack.c.bf16 %v1324_v41, %v1320_v19  ;;  %v1323_v59 = vmax.f32 %v1259_v20, 0.0  ;;  %v1328_v9 = vmax.f32 %v1264_v60, 0.0  ;;  %v1267_v27 = vadd.f32 %v3311_v55, %v3241_v46 }
 0x20b   :  { %1930 = vmatprep.subr.bf16.mxu0 %v2592_v15  ;;  %v1332_v52 = vmax.f32 %v1268_v26, 0.0  ;;  %v1327_v58 = vmax.f32 %v1263_v61, 0.0  ;;  %v1272_v6 = vadd.f32 %v3314_v3, %v3244_v57  ;;  %v1276_v37 = vadd.f32 %v3314_v3, %v3247_v54  ;;  %v2593_v57 = vld [vmem:[#allocation8 + $0x120] ss:$8 sps:$4 sm:$0xff]  }
 0x20c   :  { %v3366_v34 = vpack.c.bf16 %v1323_v59, %v1319_v25  ;;  %v1331_v56 = vmax.f32 %v1267_v27, 0.0  ;;  %v1271_v28 = vadd.f32 %v3311_v55, %v3253_v2  ;;  %v1275_v1 = vadd.f32 %v3311_v55, %v3256_v10  ;;  %v2598_v2 = vld [vmem:[#allocation8 + $0x134] ss:$8 sps:$4 sm:$0xff]  }
 0x20d   :  { %v3372_v46 = vpack.c.bf16 %v1332_v52, %v1328_v9  ;;  %v1336_v23 = vmax.f32 %v1272_v6, 0.0  ;;  %v1340_v45 = vmax.f32 %v1276_v37, 0.0  ;;  %v1280_v36 = vadd.f32 %v3314_v3, %v3259_v14 }
 0x20e   :  { %1931 = vmatpush1.bf16.msra.mxu0 %v2590_v18  ;;  %v3376_v62 = vpack.c.bf16 %v1331_v56, %v1327_v58  ;;  %v1335_v54 = vmax.f32 %v1271_v28, 0.0  ;;  %v1339_v8 = vmax.f32 %v1275_v1, 0.0  ;;  %v1284_v30 = vadd.f32 %v3314_v3, %v3262_v17 }
 0x20f   :  { %1932 = vmatprep.subr.bf16.mxu0 %v2595_v21  ;;  %v3380_v40 = vpack.c.bf16 %v1340_v45, %v1336_v23  ;;  %v1344_v10 = vmax.f32 %v1280_v36, 0.0  ;;  %v1279_v15 = vadd.f32 %v3311_v55, %v3265_v39  ;;  %v1283_v14 = vadd.f32 %v3311_v55, %v3268_v50  ;;  %v2596_v50 = vld [vmem:[#allocation8 + $0x130] ss:$8 sps:$4 sm:$0xff]  }
 0x210   :  { %v3386_v47 = vpack.c.bf16 %v1339_v8, %v1335_v54  ;;  %v1348_v19 = vmax.f32 %v1284_v30, 0.0  ;;  %v1288_v41 = vadd.f32 %v3314_v3, %v3271_v53  ;;  %v1292_v17 = vadd.f32 %v3314_v3, %v3274_v35  ;;  %v2601_v35 = vld [vmem:[#allocation8 + $0x144] ss:$8 sps:$4 sm:$0xff]  }
 0x211   :  { %1858 = vmatmul.mubr.bf16.gmra.mrb[4].mxu0 %v1403_v32  ;;  %v1343_v20 = vmax.f32 %v1279_v15, 0.0  ;;  %v1347_v60 = vmax.f32 %v1283_v14, 0.0  ;;  %v1287_v25 = vadd.f32 %v3311_v55, %v3277_v44  ;;  %v1291_v39 = vadd.f32 %v3311_v55, %v3280_v0  ;;  %v2607_v15 = vld [vmem:[#allocation8 + $0x164] ss:$8 sps:$4 sm:$0xff]  }
 0x212   :  { %1867 = vmatprep.mubr.bf16.mxu0 %v1408_v43  ;;  %1933 = vmatpush1.bf16.msra.mxu0 %v2593_v57  ;;  %v3396_v26 = vpack.c.bf16 %v1348_v19, %v1344_v10  ;;  %v1352_v61 = vmax.f32 %v1288_v41, 0.0  ;;  %v1356_v18 = vmax.f32 %v1292_v17, 0.0  ;;  %v1296_v53 = vadd.f32 %v3314_v3, %v3283_v11  ;;  %v3687_v19 = vld [vmem:[#allocation21_spill] sm:$0xff]  ;;  %v3688_v41 = vld [vmem:[#allocation23_spill] sm:$0xff] }
 0x213   :  { %1934 = vmatprep.subr.bf16.mxu0 %v2598_v2  ;;  %v3400_v32 = vpack.c.bf16 %v1347_v60, %v1343_v20  ;;  %v1351_v59 = vmax.f32 %v1287_v25, 0.0  ;;  %v1355_v9 = vmax.f32 %v1291_v39, 0.0  ;;  %v1300_v44 = vadd.f32 %v3314_v3, %v3286_v51  ;;  %v2599_v51 = vld [vmem:[#allocation8 + $0x140] ss:$8 sps:$4 sm:$0xff]  }
 0x214   :  { %v3404_v0 = vpack.c.bf16 %v1356_v18, %v1352_v61  ;;  %v1360_v43 = vmax.f32 %v1296_v53, 0.0  ;;  %v1295_v27 = vadd.f32 %v3311_v55, %v3289_v5  ;;  %v1299_v21 = vadd.f32 %v3311_v55, %v3292_v29  ;;  %v2604_v29 = vld [vmem:[#allocation8 + $0x154] ss:$8 sps:$4 sm:$0xff]   ;;  %v3685_v2 = vld [vmem:[#allocation22_spill] sm:$0xff] }
 0x215   :  { %v3410_v52 = vpack.c.bf16 %v1355_v9, %v1351_v59  ;;  %v1364_v11 = vmax.f32 %v1300_v44, 0.0  ;;  %v1242_v58 = vadd.f32 %v3318_v13, %v3296_v24  ;;  %v1246_v6 = vadd.f32 %v3318_v13, %v3300_v33  ;;  %v3689_v25 = vld [vmem:[#allocation26_spill] sm:$0xff]  ;;  %v3690_v53 = vld [vmem:[#allocation28_spill] sm:$0xff] }
 0x216   :  { %1935 = vmatpush1.bf16.msra.mxu0 %v2596_v50  ;;  %v1359_v3 = vmax.f32 %v1295_v27, 0.0  ;;  %v1363_v37 = vmax.f32 %v1299_v21, 0.0  ;;  %v1241_v56 = vadd.f32 %v3316_v22, %v3304_v7  ;;  %v1245_v5 = vadd.f32 %v3316_v22, %v3308_v31  ;;  %v2605_v59 = vld [vmem:[#allocation8 + $0x160] ss:$8 sps:$4 sm:$0xff]  }
 0x217   :  { %1936 = vmatprep.subr.bf16.mxu0 %v2601_v35  ;;  %v3420_v55 = vpack.c.bf16 %v1364_v11, %v1360_v43  ;;  %v1306_v28 = vmax.f32 %v1242_v58, 0.0  ;;  %v1310_v1 = vmax.f32 %v1246_v6, 0.0  ;;  %v1250_v24 = vadd.f32 %v3318_v13, %v3322_v38  ;;  %v2602_v38 = vld [vmem:[#allocation8 + $0x150] ss:$8 sps:$4 sm:$0xff]   ;;  %v3691_v27 = vld [vmem:[#allocation25_spill] sm:$0xff] }
 0x218   :  { %v3424_v33 = vpack.c.bf16 %v1363_v37, %v1359_v3  ;;  %v1305_v23 = vmax.f32 %v1241_v56, 0.0  ;;  %v1309_v45 = vmax.f32 %v1245_v5, 0.0  ;;  %v1254_v36 = vadd.f32 %v3318_v13, %v3326_v49  ;;  %v2610_v11 = vld [vmem:[#allocation8 + $0x174] ss:$8 sps:$4 sm:$0xff]  }
 0x219   :  { %1868 = vmatmul.mubr.bf16.gmra.mrb[8].mxu0 %v3366_v34  ;;  %v3429_v7 = vpack.c.bf16 %v1310_v1, %v1306_v28  ;;  %v1314_v31 = vmax.f32 %v1250_v24, 0.0  ;;  %v1249_v57 = vadd.f32 %v3316_v22, %v3330_v42  ;;  %v1253_v54 = vadd.f32 %v3316_v22, %v3334_v16  ;;  %v3686_v34 = vld [vmem:[#allocation24_spill] sm:$0xff]  ;;  %v3692_v3 = vld [vmem:[#allocation27_spill] sm:$0xff]  ;;  %v3693_v28 = vld [vmem:[#allocation30_spill] sm:$0xff] }
 0x21a   :  { %1877 = vmatprep.mubr.bf16.mxu0 %v3372_v46  ;;  %1937 = vmatpush1.bf16.msra.mxu0 %v2599_v51  ;;  %v3436_v8 = vpack.c.bf16 %v1309_v45, %v1305_v23  ;;  %v1318_v30 = vmax.f32 %v1254_v36, 0.0  ;;  %v1173_v49 = vmul.f32 %v3207_v63, %v3685_v2  ;;  %v1177_v10 = vmul.f32 %v3207_v63, %v3686_v34  ;;  %v3694_v36 = vld [vmem:[#allocation32_spill] sm:$0xff]  ;;  %v2613_v34 = vld [vmem:[#allocation8 + $0x184] ss:$8 sps:$4 sm:$0xff]  }
 0x21b   :  { %1938 = vmatprep.subr.bf16.mxu0 %v2604_v29  ;;  %v1313_v14 = vmax.f32 %v1249_v57, 0.0  ;;  %v1317_v42 = vmax.f32 %v1253_v54, 0.0  ;;  %v1172_v16 = vmul.f32 %v3205_v4, %v3687_v19  ;;  %v1176_v46 = vmul.f32 %v3205_v4, %v3688_v41  ;;  %v2608_v57 = vld [vmem:[#allocation8 + $0x170] ss:$8 sps:$4 sm:$0xff]  }
 0x21c   :  { %v3446_v17 = vpack.c.bf16 %v1318_v30, %v1314_v31  ;;  %v1258_v20 = vadd.f32 %v3318_v13, %v1173_v49  ;;  %v1262_v60 = vadd.f32 %v3318_v13, %v1177_v10  ;;  %v1181_v39 = vmul.f32 %v3207_v63, %v3689_v25  ;;  %v3695_v30 = vld [vmem:[#allocation29_spill] sm:$0xff]  ;;  %v3696_v49 = vld [vmem:[#allocation31_spill] sm:$0xff] }
 0x21d   :  { %v3452_v50 = vpack.c.bf16 %v1317_v42, %v1313_v14  ;;  %v1257_v61 = vadd.f32 %v3316_v22, %v1172_v16  ;;  %v1261_v18 = vadd.f32 %v3316_v22, %v1176_v46  ;;  %v1185_v35 = vmul.f32 %v3207_v63, %v3690_v53  ;;  %v3697_v42 = vld [vmem:[#allocation34_spill] sm:$0xff]  ;;  %v3698_v46 = vld [vmem:[#allocation36_spill] sm:$0xff] }
 0x21e   :  { %1939 = vmatpush1.bf16.msra.mxu0 %v2602_v38  ;;  %v1322_v9 = vmax.f32 %v1258_v20, 0.0  ;;  %v1326_v44 = vmax.f32 %v1262_v60, 0.0  ;;  %v1266_v43 = vadd.f32 %v3318_v13, %v1181_v39  ;;  %v1180_v21 = vmul.f32 %v3205_v4, %v3691_v27  ;;  %v2611_v53 = vld [vmem:[#allocation8 + $0x180] ss:$8 sps:$4 sm:$0xff]   ;;  %v2616_v27 = vld [vmem:[#allocation8 + $0x194] ss:$8 sps:$4 sm:$0xff]  }
 0x21f   :  { %1940 = vmatprep.subr.bf16.mxu0 %v2607_v15  ;;  %v1321_v58 = vmax.f32 %v1257_v61, 0.0  ;;  %v1325_v6 = vmax.f32 %v1261_v18, 0.0  ;;  %v1270_v51 = vadd.f32 %v3318_v13, %v1185_v35  ;;  %v1184_v37 = vmul.f32 %v3205_v4, %v3692_v3  ;;  %v3699_v61 = vld [vmem:[#allocation33_spill] sm:$0xff] }
 0x220   :  { %v3464_v56 = vpack.c.bf16 %v1326_v44, %v1322_v9  ;;  %v1330_v5 = vmax.f32 %v1266_v43, 0.0  ;;  %v1265_v29 = vadd.f32 %v3316_v22, %v1180_v21  ;;  %v1189_v1 = vmul.f32 %v3207_v63, %v3693_v28  ;;  %v3700_v44 = vld [vmem:[#allocation35_spill] sm:$0xff] }
 0x221   :  { %1878 = vmatmul.mubr.bf16.gmra.mrb[12].mxu0 %v3376_v62  ;;  %v3470_v24 = vpack.c.bf16 %v1325_v6, %v1321_v58  ;;  %v1334_v23 = vmax.f32 %v1270_v51, 0.0  ;;  %v1269_v45 = vadd.f32 %v3316_v22, %v1184_v37  ;;  %v1193_v31 = vmul.f32 %v3207_v63, %v3694_v36  ;;  %v3701_v6 = vld [vmem:[#allocation38_spill] sm:$0xff] }
 0x222   :  { %1887 = vmatprep.mubr.bf16.mxu0 %v3380_v40  ;;  %1941 = vmatpush1.bf16.msra.mxu0 %v2605_v59  ;;  %v1329_v54 = vmax.f32 %v1265_v29, 0.0  ;;  %v1274_v38 = vadd.f32 %v3318_v13, %v1189_v1  ;;  %v1188_v2 = vmul.f32 %v3205_v4, %v3695_v30  ;;  %v1192_v62 = vmul.f32 %v3205_v4, %v3696_v49  ;;  %v3702_v29 = vld [vmem:[#allocation40_spill] sm:$0xff]  ;;  %v3705_v49 = vld [vmem:[#allocation42_spill] sm:$0xff] }
 0x223   :  { %1942 = vmatprep.subr.bf16.mxu0 %v2610_v11  ;;  %v3481_v10 = vpack.c.bf16 %v1334_v23, %v1330_v5  ;;  %v1333_v15 = vmax.f32 %v1269_v45, 0.0  ;;  %v1278_v14 = vadd.f32 %v3318_v13, %v1193_v31  ;;  %v1197_v40 = vmul.f32 %v3207_v63, %v3697_v42  ;;  %v3703_v45 = vld [vmem:[#allocation37_spill] sm:$0xff]  ;;  %v3704_v31 = vld [vmem:[#allocation39_spill] sm:$0xff] }
 0x224   :  { %v1338_v19 = vmax.f32 %v1274_v38, 0.0  ;;  %v1273_v16 = vadd.f32 %v3316_v22, %v1188_v2  ;;  %v1277_v41 = vadd.f32 %v3316_v22, %v1192_v62  ;;  %v1201_v20 = vmul.f32 %v3207_v63, %v3698_v46  ;;  %v2619_v62 = vld [vmem:[#allocation8 + $0x1a4] ss:$8 sps:$4 sm:$0xff]  }
 0x225   :  { %v3490_v60 = vpack.c.bf16 %v1333_v15, %v1329_v54  ;;  %v1342_v25 = vmax.f32 %v1278_v14, 0.0  ;;  %v1282_v39 = vadd.f32 %v3318_v13, %v1197_v40  ;;  %v1196_v18 = vmul.f32 %v3205_v4, %v3699_v61  ;;  %v2614_v54 = vld [vmem:[#allocation8 + $0x190] ss:$8 sps:$4 sm:$0xff]   ;;  %v3706_v42 = vld [vmem:[#allocation41_spill] sm:$0xff] }
 0x226   :  { %1943 = vmatpush1.bf16.msra.mxu0 %v2608_v57  ;;  %v1337_v35 = vmax.f32 %v1273_v16, 0.0  ;;  %v1341_v59 = vmax.f32 %v1277_v41, 0.0  ;;  %v1286_v9 = vadd.f32 %v3318_v13, %v1201_v20  ;;  %v1200_v43 = vmul.f32 %v3205_v4, %v3700_v44  ;;  %v3707_v41 = vld [vmem:[#allocation43_spill] sm:$0xff] }
 0x227   :  { %1944 = vmatprep.subr.bf16.mxu0 %v2613_v34  ;;  %v3498_v21 = vpack.c.bf16 %v1342_v25, %v1338_v19  ;;  %v1346_v11 = vmax.f32 %v1282_v39, 0.0  ;;  %v1281_v58 = vadd.f32 %v3316_v22, %v1196_v18  ;;  %v1205_v51 = vmul.f32 %v3207_v63, %v3701_v6  ;;  %v2617_v39 = vld [vmem:[#allocation8 + $0x1a0] ss:$8 sps:$4 sm:$0xff]  }
 0x228   :  { %v3503_v3 = vpack.c.bf16 %v1341_v59, %v1337_v35  ;;  %v1350_v37 = vmax.f32 %v1286_v9, 0.0  ;;  %v1285_v5 = vadd.f32 %v3316_v22, %v1200_v43  ;;  %v1209_v28 = vmul.f32 %v3207_v63, %v3702_v29  ;;  %v2622_v35 = vld [vmem:[#allocation8 + $0x1b4] ss:$8 sps:$4 sm:$0xff]  }
 0x229   :  { %1888 = vmatmul.mubr.bf16.gmra.mrb[16].mxu0 %v3386_v47  ;;  %v1345_v1 = vmax.f32 %v1281_v58, 0.0  ;;  %v1290_v23 = vadd.f32 %v3318_v13, %v1205_v51  ;;  %v1204_v36 = vmul.f32 %v3205_v4, %v3703_v45  ;;  %v1208_v57 = vmul.f32 %v3205_v4, %v3704_v31  ;;  %v2632_v58 = vld [vmem:[#allocation8 + $0x1f0] ss:$8 sps:$4 sm:$0xff]  }
 0x22a   :  { %1897 = vmatprep.mubr.bf16.mxu0 %v3396_v26  ;;  %1945 = vmatpush1.bf16.msra.mxu0 %v2611_v53  ;;  %v3515_v38 = vpack.c.bf16 %v1350_v37, %v1346_v11  ;;  %v1349_v30 = vmax.f32 %v1285_v5, 0.0  ;;  %v1294_v2 = vadd.f32 %v3318_v13, %v1209_v28  ;;  %v1213_v47 = vmul.f32 %v3207_v63, %v3705_v49  ;;  %v2623_v11 = vld [vmem:[#allocation8 + $0x1c0] ss:$8 sps:$4 sm:$0xff]  }
 0x22b   :  { %1946 = vmatprep.subr.bf16.mxu0 %v2616_v27  ;;  %v1354_v34 = vmax.f32 %v1290_v23, 0.0  ;;  %v1289_v15 = vadd.f32 %v3316_v22, %v1204_v36  ;;  %v1293_v14 = vadd.f32 %v3316_v22, %v1208_v57  ;;  %v1212_v26 = vmul.f32 %v3205_v4, %v3706_v42  ;;  %v2625_v27 = vld [vmem:[#allocation8 + $0x1c4] ss:$8 sps:$4 sm:$0xff]  }
 0x22c   :  { %v1421_v40 = vpack.c.bf16 %v1349_v30, %v1345_v1  ;;  %v1358_v19 = vmax.f32 %v1294_v2, 0.0  ;;  %v1298_v16 = vadd.f32 %v3318_v13, %v1213_v47  ;;  %v1216_v46 = vmul.f32 %v3205_v4, %v3707_v41  ;;  %v2620_v4 = vld [vmem:[#allocation8 + $0x1b0] ss:$8 sps:$4 sm:$0xff]  }
 0x22d   :  { %v1353_v20 = vmax.f32 %v1289_v15, 0.0  ;;  %v1357_v25 = vmax.f32 %v1293_v14, 0.0  ;;  %v1297_v63 = vadd.f32 %v3316_v22, %v1212_v26 }
 0x22e   :  { %1947 = vmatpush1.bf16.msra.mxu0 %v2614_v54  ;;  %v1426_v61 = vpack.c.bf16 %v1358_v19, %v1354_v34  ;;  %v1362_v18 = vmax.f32 %v1298_v16, 0.0  ;;  %v1301_v53 = vadd.f32 %v3316_v22, %v1216_v46  ;;  %v2628_v22 = vld [vmem:[#allocation8 + $0x1d4] ss:$8 sps:$4 sm:$0xff]  }
 0x22f   :  { %1948 = vmatprep.subr.bf16.mxu0 %v2619_v62  ;;  %v1425_v59 = vpack.c.bf16 %v1357_v25, %v1353_v20  ;;  %v1361_v9 = vmax.f32 %v1297_v63, 0.0 }
 0x230   :  { %v1430_v13 = vpack.c.bf16 %v1366_v12, %v1362_v18  ;;  %v1365_v44 = vmax.f32 %v1301_v53, 0.0  ;;  %v2631_v12 = vld [vmem:[#allocation8 + $0x1e4] ss:$8 sps:$4 sm:$0xff]  }
 0x231   :  { %1898 = vmatmul.mubr.bf16.gmra.mrb[20].mxu0 %v3400_v32  ;;  %v2629_v32 = vld [vmem:[#allocation8 + $0x1e0] ss:$8 sps:$4 sm:$0xff]  }
 0x232   :  { %1907 = vmatprep.mubr.bf16.mxu0 %v3404_v0  ;;  %1949 = vmatpush1.bf16.msra.mxu0 %v2617_v39  ;;  %v1429_v43 = vpack.c.bf16 %v1365_v44, %v1361_v9  ;;  %v2634_v0 = vld [vmem:[#allocation8 + $0x1f4] ss:$8 sps:$4 sm:$0xff]  }
 0x233   :  { %1950 = vmatprep.subr.bf16.mxu0 %v2622_v35 }
 0x236   :  { %1951 = vmatpush1.bf16.msra.mxu0 %v2620_v4 }
 0x237   :  { %1952 = vmatprep.subr.bf16.mxu0 %v2625_v27 }
 0x239   :  { %1908 = vmatmul.mubr.bf16.gmra.mrb[24].mxu0 %v3410_v52  ;;  %v2140_v52 = vld [vmem:[%s3608_s5] sm:$0x3]  ;;  %s2745_s5 = smov [#allocation9]  }
 0x23a   :  { %1917 = vmatprep.mubr.bf16.mxu0 %v3420_v55  ;;  %1953 = vmatpush1.bf16.msra.mxu0 %v2623_v11  ;;  %v3708_v55 = vld [vmem:[#allocation44_spill] sm:$0xff]  ;;  %s2221_s16 = sshll.u32 %s2745_s5, 4  ;;  %s2222_s16 = int_to_ptr.vmem [resolvable:$true] %s2221_s16 }
 0x23b   :  { %1954 = vmatprep.subr.bf16.mxu0 %v2628_v22  ;;  %s2709_s17 = scalar_lea.vmem %s2222_s16, 4096  ;;  %p2714_p11 = scmp.lt.s32.totalorder %s2222_s16, %s2222_s16 }
 0x23c   :  { %p2710_p10 = scmp.ne.s32.totalorder %s2222_s16, %s2709_s17  ;;  %p2715_p12 = scmp.lt.s32.totalorder %s2709_s17, %s2709_s17 }
 0x23e   :  { %1955 = vmatpush1.bf16.msra.mxu0 %v2626_v48  ;;  %p2716_p13 = por %p2715_p12, %p2714_p11 }
 0x23f   :  { %1956 = vmatprep.subr.bf16.mxu0 %v2631_v12 }
 0x240   :  { %p2717_p0 = pnand %p2716_p13, %p2710_p10 }
 0x241   :  { %1918 = vmatmul.mubr.bf16.gmra.mrb[28].mxu0 %v3424_v33  ;;  %v3551_v33 = vrot.slane %v2140_v52, %v3708_v55 }
 0x242   :  { %1957 = vmatpush1.bf16.msra.mxu0 %v2629_v32  ;;  %1960 = vmatprep.mubr.bf16.mxu0 %v3429_v7  ;;  %v3709_v7 = vld [vmem:[#allocation45_spill] sm:$0xff] }
 0x243   :  { %1958 = vmatprep.subr.bf16.mxu0 %v2634_v0 }
 0x246   :  { %1959 = vmatpush1.bf16.msra.mxu0 %v2632_v58 }
 0x249   :  { %1961 = vmatmul.mubr.bf16.vlgmr.msra.gmra.mrb[0].mxu0 %v3436_v8  ;;  %v3554_v8 = vrot.slane %v2140_v52, %v3709_v7 }
 0x24a   :  { %1970 = vmatprep.mubr.bf16.mxu0 %v3446_v17 }
 0x251   :  { %1971 = vmatmul.mubr.bf16.gmra.mrb[4].mxu0 %v3452_v50 }
 0x252   :  { %1980 = vmatprep.mubr.bf16.mxu0 %v3464_v56 }
 0x259   :  { %1981 = vmatmul.mubr.bf16.gmra.mrb[8].mxu0 %v3470_v24 }
 0x25a   :  { %1990 = vmatprep.mubr.bf16.mxu0 %v3481_v10 }
 0x261   :  { %1991 = vmatmul.mubr.bf16.gmra.mrb[12].mxu0 %v3490_v60 }
 0x262   :  { %2000 = vmatprep.mubr.bf16.mxu0 %v3498_v21 }
 0x269   :  { %2001 = vmatmul.mubr.bf16.gmra.mrb[16].mxu0 %v3503_v3 }
 0x26a   :  { %2010 = vmatprep.mubr.bf16.mxu0 %v3515_v38 }
 0x271   :  { %2011 = vmatmul.mubr.bf16.gmra.mrb[20].mxu0 %v1421_v40 }
 0x272   :  { %2020 = vmatprep.mubr.bf16.mxu0 %v1426_v61 }
 0x279   :  { %2021 = vmatmul.mubr.bf16.gmra.mrb[24].mxu0 %v1425_v59 }
 0x27a   :  { %2030 = vmatprep.mubr.bf16.mxu0 %v1430_v13 }
 0x281   :  { %2031 = vmatmul.mubr.bf16.gmra.mrb[28].mxu0 %v1429_v43 }
 0x31c   :  { %v1962_v17 = vpop.f32.mrb[0].mxu0 }
 0x31d   :  { %v2152_v50 = vadd.f32 %v3551_v33, %v1962_v17  ;;  %v1964_v56 = vpop.f32.mrb[1].mxu0 }
 0x31e   :  { %v2153_v24 = vadd.f32 %v3554_v8, %v1964_v56  ;;  %v1966_v10 = vpop.f32.mrb[2].mxu0 }
 0x31f   :  { %2184 = vst [vmem:[#allocation9] sm:$0xff] %v2152_v50  ;;  %v2154_v60 = vadd.f32 %v3551_v33, %v1966_v10  ;;  %v1968_v21 = vpop.f32.mrb[3].mxu0 }
 0x320   :  { %2185 = vst [vmem:[#allocation9 + $0x8] sm:$0xff] %v2153_v24  ;;  %v2155_v6 = vadd.f32 %v3554_v8, %v1968_v21 }
 0x321   :  { %2186 = vst [vmem:[#allocation9 + $0x10] sm:$0xff] %v2154_v60 }
 0x322   :  { %2187 = vst [vmem:[#allocation9 + $0x18] sm:$0xff] %v2155_v6 }
 0x324   :  { %v1972_v51 = vpop.f32.mrb[4].mxu0 }
 0x325   :  { %v2156_v3 = vadd.f32 %v3551_v33, %v1972_v51  ;;  %v1974_v37 = vpop.f32.mrb[5].mxu0 }
 0x326   :  { %v2157_v5 = vadd.f32 %v3554_v8, %v1974_v37  ;;  %v1976_v29 = vpop.f32.mrb[6].mxu0 }
 0x327   :  { %2188 = vst [vmem:[#allocation9 + $0x20] sm:$0xff] %v2156_v3  ;;  %v2158_v28 = vadd.f32 %v3551_v33, %v1976_v29  ;;  %v1978_v1 = vpop.f32.mrb[7].mxu0 }
 0x328   :  { %2189 = vst [vmem:[#allocation9 + $0x28] sm:$0xff] %v2157_v5  ;;  %v2159_v23 = vadd.f32 %v3554_v8, %v1978_v1 }
 0x329   :  { %2190 = vst [vmem:[#allocation9 + $0x30] sm:$0xff] %v2158_v28 }
 0x32a   :  { %2191 = vst [vmem:[#allocation9 + $0x38] sm:$0xff] %v2159_v23 }
 0x32c   :  { %v1982_v45 = vpop.f32.mrb[8].mxu0 }
 0x32d   :  { %v2160_v36 = vadd.f32 %v3551_v33, %v1982_v45  ;;  %v1984_v31 = vpop.f32.mrb[9].mxu0 }
 0x32e   :  { %v2161_v57 = vadd.f32 %v3554_v8, %v1984_v31  ;;  %v1986_v54 = vpop.f32.mrb[10].mxu0 }
 0x32f   :  { %2192 = vst [vmem:[#allocation9 + $0x40] sm:$0xff] %v2160_v36  ;;  %v2162_v38 = vadd.f32 %v3551_v33, %v1986_v54  ;;  %v1988_v30 = vpop.f32.mrb[11].mxu0 }
 0x330   :  { %2193 = vst [vmem:[#allocation9 + $0x48] sm:$0xff] %v2161_v57  ;;  %v2163_v2 = vadd.f32 %v3554_v8, %v1988_v30 }
 0x331   :  { %2194 = vst [vmem:[#allocation9 + $0x50] sm:$0xff] %v2162_v38 }
 0x332   :  { %2195 = vst [vmem:[#allocation9 + $0x58] sm:$0xff] %v2163_v2 }
 0x334   :  { %v1992_v49 = vpop.f32.mrb[12].mxu0 }
 0x335   :  { %v2164_v47 = vadd.f32 %v3551_v33, %v1992_v49  ;;  %v1994_v62 = vpop.f32.mrb[13].mxu0 }
 0x336   :  { %v2165_v34 = vadd.f32 %v3554_v8, %v1994_v62  ;;  %v1996_v15 = vpop.f32.mrb[14].mxu0 }
 0x337   :  { %2196 = vst [vmem:[#allocation9 + $0x60] sm:$0xff] %v2164_v47  ;;  %v2166_v14 = vadd.f32 %v3551_v33, %v1996_v15  ;;  %v1998_v42 = vpop.f32.mrb[15].mxu0 }
 0x338   :  { %2197 = vst [vmem:[#allocation9 + $0x68] sm:$0xff] %v2165_v34  ;;  %v2167_v26 = vadd.f32 %v3554_v8, %v1998_v42 }
 0x339   :  { %2198 = vst [vmem:[#allocation9 + $0x70] sm:$0xff] %v2166_v14 }
 0x33a   :  { %2199 = vst [vmem:[#allocation9 + $0x78] sm:$0xff] %v2167_v26 }
 0x33c   :  { %v2002_v40 = vpop.f32.mrb[16].mxu0 }
 0x33d   :  { %v2168_v19 = vadd.f32 %v3551_v33, %v2002_v40  ;;  %v2004_v16 = vpop.f32.mrb[17].mxu0 }
 0x33e   :  { %v2169_v41 = vadd.f32 %v3554_v8, %v2004_v16  ;;  %v2006_v46 = vpop.f32.mrb[18].mxu0 }
 0x33f   :  { %2200 = vst [vmem:[#allocation9 + $0x80] sm:$0xff] %v2168_v19  ;;  %v2170_v20 = vadd.f32 %v3551_v33, %v2006_v46  ;;  %v2008_v25 = vpop.f32.mrb[19].mxu0 }
 0x340   :  { %2201 = vst [vmem:[#allocation9 + $0x88] sm:$0xff] %v2169_v41  ;;  %v2171_v63 = vadd.f32 %v3554_v8, %v2008_v25 }
 0x341   :  { %2202 = vst [vmem:[#allocation9 + $0x90] sm:$0xff] %v2170_v20 }
 0x342   :  { %2203 = vst [vmem:[#allocation9 + $0x98] sm:$0xff] %v2171_v63 }
 0x344   :  { %v2012_v39 = vpop.f32.mrb[20].mxu0 }
 0x345   :  { %v2172_v61 = vadd.f32 %v3551_v33, %v2012_v39  ;;  %v2014_v18 = vpop.f32.mrb[21].mxu0 }
 0x346   :  { %v2173_v53 = vadd.f32 %v3554_v8, %v2014_v18  ;;  %v2016_v35 = vpop.f32.mrb[22].mxu0 }
 0x347   :  { %2204 = vst [vmem:[#allocation9 + $0xa0] sm:$0xff] %v2172_v61  ;;  %v2174_v59 = vadd.f32 %v3551_v33, %v2016_v35  ;;  %v2018_v9 = vpop.f32.mrb[23].mxu0 }
 0x348   :  { %2205 = vst [vmem:[#allocation9 + $0xa8] sm:$0xff] %v2173_v53  ;;  %v2175_v13 = vadd.f32 %v3554_v8, %v2018_v9 }
 0x349   :  { %2206 = vst [vmem:[#allocation9 + $0xb0] sm:$0xff] %v2174_v59 }
 0x34a   :  { %2207 = vst [vmem:[#allocation9 + $0xb8] sm:$0xff] %v2175_v13 }
 0x34c   :  { %v2022_v44 = vpop.f32.mrb[24].mxu0 }
 0x34d   :  { %v2176_v4 = vadd.f32 %v3551_v33, %v2022_v44  ;;  %v2024_v43 = vpop.f32.mrb[25].mxu0 }
 0x34e   :  { %v2177_v27 = vadd.f32 %v3554_v8, %v2024_v43  ;;  %v2026_v11 = vpop.f32.mrb[26].mxu0 }
 0x34f   :  { %2208 = vst [vmem:[#allocation9 + $0xc0] sm:$0xff] %v2176_v4  ;;  %v2178_v22 = vadd.f32 %v3551_v33, %v2026_v11  ;;  %v2028_v48 = vpop.f32.mrb[27].mxu0 }
 0x350   :  { %2209 = vst [vmem:[#allocation9 + $0xc8] sm:$0xff] %v2177_v27  ;;  %v2179_v12 = vadd.f32 %v3554_v8, %v2028_v48 }
 0x351   :  { %2210 = vst [vmem:[#allocation9 + $0xd0] sm:$0xff] %v2178_v22 }
 0x352   :  { %2211 = vst [vmem:[#allocation9 + $0xd8] sm:$0xff] %v2179_v12 }
 0x354   :  { %v2032_v32 = vpop.f32.mrb[28].mxu0 }
 0x355   :  { %v2180_v0 = vadd.f32 %v3551_v33, %v2032_v32  ;;  %v2034_v58 = vpop.f32.mrb[29].mxu0 }
 0x356   :  { %v2181_v52 = vadd.f32 %v3554_v8, %v2034_v58  ;;  %v2036_v55 = vpop.f32.mrb[30].mxu0 }
 0x357   :  { %2212 = vst [vmem:[#allocation9 + $0xe0] sm:$0xff] %v2180_v0  ;;  %v2182_v7 = vadd.f32 %v3551_v33, %v2036_v55  ;;  %v2038_v17 = vpop.f32.mrb[31].mxu0 }
 0x358   :  { %2213 = vst [vmem:[#allocation9 + $0xe8] sm:$0xff] %v2181_v52  ;;  %v2183_v50 = vadd.f32 %v3554_v8, %v2038_v17 }
 0x359   :  { %2214 = vst [vmem:[#allocation9 + $0xf0] sm:$0xff] %v2182_v7 }
 0x35a   :  { %2215 = vst [vmem:[#allocation9 + $0xf8] sm:$0xff] %v2183_v50 }
 0x35b   :  { %2720 = shalt.err (!%p2717_p0)
}
 0x35c   :  { %s2721_s20 = scalar_lea.hbm %s3609_s6, 4096 }
 0x35d   :  { %p2722_p1 = scmp.ne.s32.totalorder %s3609_s6, %s2721_s20  ;;  %p2725_p2 = scmp.lt.u32.totalorder %s2721_s20, %s3609_s6 }
 0x35f   :  { %p2727_p3 = pnand %p2725_p2, %p2722_p1 }
 0x361   :  { %2730 = shalt.err (!%p2727_p3)
}
 0x362   :  { %2227 = dma.vmem_to_hbm [thread:$0]  %s2222_s16, 4096, %s3609_s6, [#allocation5], %s2738_s7, %s2738_s7, %s2739_s8  }
 0x363   :  { %2735 = dma.done.wait [#allocation5], 4096  }
 0x364   :  { %2736 = vsyncadd [#allocation5], 4294963200 }
 0x365   :  { %2231 = vsyncpa [#allocation4], 1 }
 0x366   :  { %2232 = vsyncpa [#allocation7], 1 }
 0x367   :  { %2233 = vsyncpa [#allocation5], 1 }

</bundles_post_ra>
